<compile_context>
chip_gen: v6e
topology: v6e:2x2x1
jax: 0.10.0
libtpu: 0.0.40
codegen_flags: <defaults>
</compile_context>

<pallas_src>
import jax
import jax.numpy as jnp
from jax.experimental import pallas as pl
from jax.experimental.pallas import tpu as pltpu


# -----------------------------------------------------------------------------
# Synthetic PilotNet config (cfg is not provided; shapes kept small on purpose)
# -----------------------------------------------------------------------------
INPUT_CHANNELS = 3
CNN_LAYERS = [
    dict(out_channels=8, kernel=5, stride=2),   # 32 -> 14
    dict(out_channels=12, kernel=5, stride=2),  # 14 -> 5
    dict(out_channels=16, kernel=3, stride=1),  # 5  -> 3
]
FC_LAYERS = [dict(to_size=64), dict(to_size=32)]   # FeedForward: Linear + ELU per layer
NBITS = 16
CODE_DIM = 700
IMG_H, IMG_W = 32, 32
_LANE = 128
CODE_DIM_PAD = ((CODE_DIM + _LANE - 1) // _LANE) * _LANE    # 768: lane-dense HBM output


# -----------------------------------------------------------------------------
# Parameter init (mirrors the PyTorch module's parameter shapes / semantics)
# -----------------------------------------------------------------------------
def init_params(key):
    params = {"cnn": [], "fc": []}
    c_in = INPUT_CHANNELS
    h, w = IMG_H, IMG_W
    for cfg in CNN_LAYERS:
        key, kw_, kb_ = jax.random.split(key, 3)
        k, o = cfg["kernel"], cfg["out_channels"]
        scale = 1.0 / jnp.sqrt(c_in * k * k)
        params["cnn"].append((
            jax.random.uniform(kw_, (o, c_in, k, k), jnp.float32, -scale, scale),
            jax.random.uniform(kb_, (o,), jnp.float32, -scale, scale),
            cfg["stride"],
        ))
        c_in = o
        h = (h - k) // cfg["stride"] + 1
        w = (w - k) // cfg["stride"] + 1

    d_in = c_in * h * w
    for cfg in FC_LAYERS:
        key, kw_, kb_ = jax.random.split(key, 3)
        d_out = cfg["to_size"]
        scale = 1.0 / jnp.sqrt(d_in)
        params["fc"].append((
            jax.random.uniform(kw_, (d_in, d_out), jnp.float32, -scale, scale),
            jax.random.uniform(kb_, (d_out,), jnp.float32, -scale, scale),
        ))
        d_in = d_out

    key, kw_, kb_, kc_ = jax.random.split(key, 4)
    scale = 1.0 / jnp.sqrt(d_in)
    params["to_out"] = (
        jax.random.uniform(kw_, (d_in, NBITS), jnp.float32, -scale, scale),
        jax.random.uniform(kb_, (NBITS,), jnp.float32, -scale, scale),
    )
    # torch.rand(nbits, 700): uniform [0, 1).
    # TODO(synk): pickle-loaded encodings ('./encodings/*.pkl') cannot be reproduced
    # here; synthetic deterministic init instead.
    params["code"] = jax.random.uniform(kc_, (NBITS, CODE_DIM), jnp.float32)
    return params


# -----------------------------------------------------------------------------
# Host-side (one-time) weight preprocessing
# -----------------------------------------------------------------------------
def _conv_as_single_matmul(wt, bias, h_in, w_in, stride, fold_normalize):
    """Rewrites a VALID-padding Conv2d (PyTorch semantics) as ONE matmul.

    Activation layout is (H, W*C + pad->128) per batch element.  The kernel builds
        slab = concat_a act[oh*stride + a, :]      -> (OH, kh*128)
    and computes  conv_out = slab @ M_stacked + brow  (layout (OH, OW*O + pad->128)),
    where M_stacked rows [a*128 + (w*C+c)] hold  w_eff[o, c, a, w - ow*stride].
    """
    o_ch, c_ch, kh, kw = wt.shape
    oh = (h_in - kh) // stride + 1
    ow = (w_in - kw) // stride + 1
    assert w_in * c_ch <= _LANE and ow * o_ch <= _LANE, "layer too wide for 128-lane block"

    w_eff = wt.astype(jnp.float32)
    b_eff = bias.astype(jnp.float32)
    if fold_normalize:
        # conv(x/127.5 - 1, w, b) == conv(x, w/127.5, b - sum_{c,kh,kw} w)
        b_eff = b_eff - w_eff.sum(axis=(1, 2, 3))
        w_eff = w_eff / 127.5

    win_i = jnp.arange(w_in)[:, None]                                    # (W, 1)
    ow_i = jnp.arange(ow)[None, :]                                       # (1, OW)
    bb = win_i - ow_i * stride                                           # (W, OW)
    valid = (bb >= 0) & (bb < kw)
    bb_c = jnp.clip(bb, 0, kw - 1)
    w_t = w_eff.transpose(2, 3, 1, 0)                                    # (KH, KW, C, O)
    vals = w_t[:, bb_c, :, :]                                            # (KH, W, OW, C, O)
    vals = jnp.where(valid[None, :, :, None, None], vals, 0.0)
    m = vals.transpose(0, 1, 3, 2, 4).reshape(kh, w_in * c_ch, ow * o_ch)

    m_pad = jnp.zeros((kh, _LANE, _LANE), jnp.float32)
    m_pad = m_pad.at[:, :w_in * c_ch, :ow * o_ch].set(m)
    m_stk = m_pad.reshape(kh * _LANE, _LANE)                             # (kh*128, 128)

    brow_flat = jnp.tile(b_eff[None, :], (ow, 1)).reshape(-1)
    brow = jnp.zeros((1, _LANE), jnp.float32).at[0, :ow * o_ch].set(brow_flat)
    return m_stk, brow, oh, ow


def prepare_params(params):
    """One-time transform: pack ALL weights into one bf16 buffer + one f32 bias buffer."""
    h, w = IMG_H, IMG_W
    w_blocks, bias_rows = [], []
    conv_meta = []
    row_off = 0
    for li, (wt, bias, stride) in enumerate(params["cnn"]):
        kh = wt.shape[2]
        m_stk, brow, oh, ow = _conv_as_single_matmul(
            wt, bias, h, w, stride, fold_normalize=(li == 0))
        conv_meta.append(dict(h_in=h, oh=oh, stride=stride, kh=kh,
                              m_off=row_off, bias_row=len(bias_rows)))
        w_blocks.append(m_stk)
        bias_rows.append(brow)
        row_off += m_stk.shape[0]
        h, w = oh, ow

    c_last = params["cnn"][-1][0].shape[0]
    h3, w3 = h, w
    fc_meta = []

    # FC1: permute rows from torch's (c, oh, ow) flatten order into the kernel's
    # (oh, ow*C + c) layout, pad each per-row block to 128 lanes, stack to (h3*128, d1).
    fc1_w, fc1_b = params["fc"][0]
    d_prev = fc1_w.shape[1]
    fc1_stk = (fc1_w.reshape(c_last, h3, w3, d_prev)
               .transpose(1, 2, 0, 3)
               .reshape(h3, w3 * c_last, d_prev))
    assert w3 * c_last <= _LANE and d_prev <= _LANE
    fc1_pad = jnp.zeros((h3, _LANE, _LANE), jnp.float32)
    fc1_pad = fc1_pad.at[:, :w3 * c_last, :d_prev].set(fc1_stk).reshape(h3 * _LANE, _LANE)
    fc_meta.append(dict(m_off=row_off, n_rows=h3 * _LANE, bias_row=len(bias_rows)))
    w_blocks.append(fc1_pad)
    bias_rows.append(jnp.zeros((1, _LANE), jnp.float32).at[0, :d_prev].set(fc1_b))
    row_off += h3 * _LANE

    for (wt, bias) in params["fc"][1:]:
        d_in, d_out = wt.shape
        assert d_in <= _LANE and d_out <= _LANE
        blk = jnp.zeros((_LANE, _LANE), jnp.float32).at[:d_in, :d_out].set(wt)
        fc_meta.append(dict(m_off=row_off, n_rows=_LANE, bias_row=len(bias_rows)))
        w_blocks.append(blk)
        bias_rows.append(jnp.zeros((1, _LANE), jnp.float32).at[0, :d_out].set(bias))
        row_off += _LANE
        d_prev = d_out

    out_w, out_b = params["to_out"]
    blk = jnp.zeros((_LANE, _LANE), jnp.float32).at[:d_prev, :NBITS].set(out_w)
    out_meta = dict(m_off=row_off, n_rows=_LANE, bias_row=len(bias_rows))
    w_blocks.append(blk)
    bias_rows.append(jnp.zeros((1, _LANE), jnp.float32).at[0, :NBITS].set(out_b))
    row_off += _LANE

    code_pad = jnp.zeros((_LANE, CODE_DIM_PAD), jnp.float32)
    code_pad = code_pad.at[:NBITS, :CODE_DIM].set(params["code"])

    bufs = dict(
        w=jnp.concatenate(w_blocks, axis=0).astype(jnp.bfloat16),   # (2304, 128) bf16
        bias=jnp.concatenate(bias_rows, axis=0),                    # (6, 128)    f32
        code=code_pad.astype(jnp.bfloat16),                         # (128, 768)  bf16
    )
    meta = dict(conv=conv_meta, fc=fc_meta, out=out_meta, fcin_width=h3 * _LANE)
    return bufs, meta


# -----------------------------------------------------------------------------
# The single fused Pallas kernel
# -----------------------------------------------------------------------------
def _make_kernel(batch, meta):
    conv_meta, fc_meta, out_meta = meta["conv"], meta["fc"], meta["out"]
    n_conv = len(conv_meta)

    def elu(v):
        # ELU(alpha=1), f32 math on all generations.  Negative branch ~ expm1(v):
        # 2nd-order series near 0 (no exp(v)-1 cancellation), exp(v)-1 elsewhere.
        em1 = jnp.where(v > -1e-3, v * (1.0 + 0.5 * v), jnp.exp(v) - 1.0)
        return jnp.where(v > 0.0, v, em1)

    def kernel(*refs):
        x_ref, w_ref, bias_ref, code_ref, out_ref, preds_ref = refs[:6]
        scr = refs[6:]
        act_scr = list(scr[:n_conv - 1])          # inter-conv activations (f32, VMEM)
        fcin_ref = scr[n_conv - 1]                # (B, 3*128) batched FC input
        src_refs = [x_ref] + act_scr

        # ---- conv stack: ONE MXU dot per (layer, batch element) ----
        for li, cm in enumerate(conv_meta):
            h_in, oh, s, kh = cm["h_in"], cm["oh"], cm["stride"], cm["kh"]
            m = w_ref[cm["m_off"]:cm["m_off"] + kh * _LANE, :]            # (kh*128,128) bf16
            brow = bias_ref[cm["bias_row"]:cm["bias_row"] + 1, :]         # (1,128) f32
            src = src_refs[li]
            for b in range(batch):
                base = b * h_in
                slabs = []
                for a in range(kh):
                    if s == 1:
                        slabs.append(src[pl.ds(base + a, oh), :])
                    else:
                        slabs.append(src[pl.ds(base + a, oh, stride=s), :])
                # (oh, kh*128): strided sublane slices, lane-block-aligned concat.
                slab = jnp.concatenate(slabs, axis=1).astype(jnp.bfloat16)
                y = elu(jnp.dot(slab, m, preferred_element_type=jnp.float32) + brow)
                if li + 1 < n_conv:
                    act_scr[li][b * oh:(b + 1) * oh, :] = y
                else:
                    # flatten conv3 rows into lane blocks of the batched FC input
                    for r in range(oh):
                        fcin_ref[b:b + 1, r * _LANE:(r + 1) * _LANE] = y[r:r + 1, :]

        # ---- dense tail, batched over sublanes (every dot has M = batch) ----
        h = fcin_ref[...].astype(jnp.bfloat16)                            # (B, 3*128)
        for fm in fc_meta:
            y = jnp.dot(h, w_ref[fm["m_off"]:fm["m_off"] + fm["n_rows"], :],
                        preferred_element_type=jnp.float32)
            h = elu(y + bias_ref[fm["bias_row"]:fm["bias_row"] + 1, :]).astype(jnp.bfloat16)
        pred = (jnp.dot(h, w_ref[out_meta["m_off"]:out_meta["m_off"] + out_meta["n_rows"], :],
                        preferred_element_type=jnp.float32)
                + bias_ref[out_meta["bias_row"]:out_meta["bias_row"] + 1, :])  # (B,128) f32
        preds_ref[...] = pred                                             # lane-dense store
        out_ref[...] = jnp.dot(pred.astype(jnp.bfloat16), code_ref[...],
                               preferred_element_type=jnp.float32)        # (B,768) lane-dense
    return kernel


def build_forward(meta):
    conv_meta = meta["conv"]

    @jax.jit
    def forward(bufs, x_nhwc):
        """Eval-mode forward. Returns (x, predictions) like the PyTorch module."""
        B, H, W, C = x_nhwc.shape
        assert H == IMG_H and W == IMG_W and C == INPUT_CHANNELS
        # channels-last (H, W*C) layout, lane-padded to 128, batch stacked over rows
        x2 = x_nhwc.astype(jnp.float32).reshape(B, H, W * C)
        x2 = jnp.pad(x2, ((0, 0), (0, 0), (0, _LANE - W * C))).reshape(B * H, _LANE)

        scratch = [pltpu.VMEM((B * cm["oh"], _LANE), jnp.float32) for cm in conv_meta[:-1]]
        scratch.append(pltpu.VMEM((B, meta["fcin_width"]), jnp.float32))

        kernel = _make_kernel(B, meta)
        out_pad, preds_pad = pl.pallas_call(
            kernel,
            out_shape=(
                jax.ShapeDtypeStruct((B, CODE_DIM_PAD), jnp.float32),
                jax.ShapeDtypeStruct((B, _LANE), jnp.float32),
            ),
            scratch_shapes=scratch,
            # Grid-less: every operand (~0.8 MiB) is whole-array VMEM resident for the
            # single invocation; a grid would only add per-step overhead here.
            # TODO(synk): for large B, add a leading "parallel" batch grid axis so both
            # v7x TensorCores are used.
        )(x2, bufs["w"], bufs["bias"], bufs["code"])
        return out_pad[:, :CODE_DIM], preds_pad[:, :NBITS]

    return forward


# -----------------------------------------------------------------------------
# Pure-JAX reference of the PyTorch forward (for verification only)
# -----------------------------------------------------------------------------
def pilotnet_reference(params, x_nhwc):
    hp = jax.lax.Precision.HIGHEST
    x = x_nhwc.astype(jnp.float32) / 127.5 - 1.0
    x = x.transpose(0, 3, 1, 2)                               # NHWC -> NCHW
    for wt, bias, stride in params["cnn"]:
        x = jax.lax.conv_general_dilated(
            x, wt, window_strides=(stride, stride), padding="VALID",
            dimension_numbers=("NCHW", "OIHW", "NCHW"), precision=hp)
        x = x + bias[None, :, None, None]
        x = jnp.where(x > 0, x, jnp.expm1(x))
    h = x.reshape(x.shape[0], -1)
    for wt, bias in params["fc"]:
        h = jnp.dot(h, wt, precision=hp) + bias
        h = jnp.where(h > 0, h, jnp.expm1(h))
    w_out, b_out = params["to_out"]
    preds = jnp.dot(h, w_out, precision=hp) + b_out
    return jnp.dot(preds, params["code"], precision=hp), preds


if __name__ == "__main__":
    key = jax.random.PRNGKey(0)
    key, kx = jax.random.split(key)
    params = init_params(key)
    bufs, meta = prepare_params(params)      # one-time weight preprocessing / packing
    forward = build_forward(meta)

    # raw uint8-like pixel values in [0, 255), NHWC — matches the PyTorch input
    x = jax.random.uniform(kx, (2, IMG_H, IMG_W, INPUT_CHANNELS), jnp.float32,
                           0.0, 255.0)

    out, preds = forward(bufs, x)
    jax.block_until_ready(out)
    jax.block_until_ready(preds)

    assert out.shape == (2, CODE_DIM), out.shape
    assert preds.shape == (2, NBITS), preds.shape

    # Verify against the pure-JAX f32/HIGHEST reference (loose tol: bf16 MXU operands).
    ref_out, ref_preds = pilotnet_reference(params, x)
    assert jnp.allclose(preds, ref_preds, rtol=5e-2, atol=5e-2), \
        float(jnp.max(jnp.abs(preds - ref_preds)))
    assert jnp.allclose(out, ref_out, rtol=5e-2, atol=5e-2), \
        float(jnp.max(jnp.abs(out - ref_out)))

    print("KERNEL_OK")
</pallas_src>

<mosaic_0001>
module attributes {stable_mosaic.version = 11 : i64} {
  func.func @kernel(%arg0: memref<64x128xf32, #tpu.memory_space<vmem>>, %arg1: memref<2304x128xbf16, #tpu.memory_space<vmem>>, %arg2: memref<6x128xf32, #tpu.memory_space<vmem>>, %arg3: memref<128x768xbf16, #tpu.memory_space<vmem>>, %arg4: memref<2x768xf32, #tpu.memory_space<vmem>>, %arg5: memref<2x128xf32, #tpu.memory_space<vmem>>, %arg6: memref<28x128xf32, #tpu.memory_space<vmem>>, %arg7: memref<10x128xf32, #tpu.memory_space<vmem>>, %arg8: memref<2x384xf32, #tpu.memory_space<vmem>>) attributes {dimension_semantics = [], scalar_prefetch = 0 : i64, scratch_operands = 3 : i64, tpu.core_type = #tpu.core_type<tc>} {
    %c0 = arith.constant 0 : index
    %c0_0 = arith.constant 0 : index
    %0 = vector.load %arg1[%c0, %c0_0] : memref<2304x128xbf16, #tpu.memory_space<vmem>>, vector<640x128xbf16>
    %c0_1 = arith.constant 0 : index
    %c0_2 = arith.constant 0 : index
    %1 = vector.load %arg2[%c0_1, %c0_2] : memref<6x128xf32, #tpu.memory_space<vmem>>, vector<1x128xf32>
    %c0_3 = arith.constant 0 : index
    %c0_4 = arith.constant 0 : index
    %2 = tpu.strided_load %arg0[%c0_3, %c0_4] {strides = array<i32: 2, 1>} : memref<64x128xf32, #tpu.memory_space<vmem>>, vector<14x128xf32>
    %c1 = arith.constant 1 : index
    %c0_5 = arith.constant 0 : index
    %3 = tpu.strided_load %arg0[%c1, %c0_5] {strides = array<i32: 2, 1>} : memref<64x128xf32, #tpu.memory_space<vmem>>, vector<14x128xf32>
    %c2 = arith.constant 2 : index
    %c0_6 = arith.constant 0 : index
    %4 = tpu.strided_load %arg0[%c2, %c0_6] {strides = array<i32: 2, 1>} : memref<64x128xf32, #tpu.memory_space<vmem>>, vector<14x128xf32>
    %c3 = arith.constant 3 : index
    %c0_7 = arith.constant 0 : index
    %5 = tpu.strided_load %arg0[%c3, %c0_7] {strides = array<i32: 2, 1>} : memref<64x128xf32, #tpu.memory_space<vmem>>, vector<14x128xf32>
    %c4 = arith.constant 4 : index
    %c0_8 = arith.constant 0 : index
    %6 = tpu.strided_load %arg0[%c4, %c0_8] {strides = array<i32: 2, 1>} : memref<64x128xf32, #tpu.memory_space<vmem>>, vector<14x128xf32>
    %7 = tpu.concatenate %2, %3, %4, %5, %6 in 1 : vector<14x128xf32>, vector<14x128xf32>, vector<14x128xf32>, vector<14x128xf32>, vector<14x128xf32> -> vector<14x640xf32>
    %8 = arith.truncf %7 : vector<14x640xf32> to vector<14x640xbf16>
    %cst = arith.constant dense<0.000000e+00> : vector<14x128xf32>
    %9 = tpu.matmul %8, %0, %cst {dimension_numbers = #tpu.dot_dimension_numbers<[1], [0], [0], [1], [0, 0, 1, 1], [], []>} : vector<14x640xbf16>, vector<640x128xbf16>, vector<14x128xf32> -> vector<14x128xf32>
    %10 = vector.broadcast %1 : vector<1x128xf32> to vector<14x128xf32>
    %11 = arith.addf %9, %10 : vector<14x128xf32>
    %cst_9 = arith.constant -1.000000e-03 : f32
    %12 = vector.broadcast %cst_9 : f32 to vector<14x128xf32>
    %13 = arith.cmpf ogt, %11, %12 : vector<14x128xf32>
    %cst_10 = arith.constant 5.000000e-01 : f32
    %14 = vector.broadcast %cst_10 : f32 to vector<14x128xf32>
    %15 = arith.mulf %14, %11 : vector<14x128xf32>
    %cst_11 = arith.constant 1.000000e+00 : f32
    %16 = vector.broadcast %cst_11 : f32 to vector<14x128xf32>
    %17 = arith.addf %16, %15 : vector<14x128xf32>
    %18 = arith.mulf %11, %17 : vector<14x128xf32>
    %19 = math.exp %11 : vector<14x128xf32>
    %cst_12 = arith.constant 1.000000e+00 : f32
    %20 = vector.broadcast %cst_12 : f32 to vector<14x128xf32>
    %21 = arith.subf %19, %20 : vector<14x128xf32>
    %22 = arith.select %13, %18, %21 : vector<14x128xi1>, vector<14x128xf32>
    %cst_13 = arith.constant 0.000000e+00 : f32
    %23 = vector.broadcast %cst_13 : f32 to vector<14x128xf32>
    %24 = arith.cmpf ogt, %11, %23 : vector<14x128xf32>
    %25 = arith.select %24, %11, %22 : vector<14x128xi1>, vector<14x128xf32>
    %c0_14 = arith.constant 0 : index
    %c0_15 = arith.constant 0 : index
    %26 = vector.load %arg6[%c0_14, %c0_15] : memref<28x128xf32, #tpu.memory_space<vmem>>, vector<14x128xf32>
    tpu.vector_store %arg6[%c0_14, %c0_15], %25 {strides = array<i32>} : memref<28x128xf32, #tpu.memory_space<vmem>>, vector<14x128xf32>,
    %c32 = arith.constant 32 : index
    %c0_16 = arith.constant 0 : index
    %27 = tpu.strided_load %arg0[%c32, %c0_16] {strides = array<i32: 2, 1>} : memref<64x128xf32, #tpu.memory_space<vmem>>, vector<14x128xf32>
    %c33 = arith.constant 33 : index
    %c0_17 = arith.constant 0 : index
    %28 = tpu.strided_load %arg0[%c33, %c0_17] {strides = array<i32: 2, 1>} : memref<64x128xf32, #tpu.memory_space<vmem>>, vector<14x128xf32>
    %c34 = arith.constant 34 : index
    %c0_18 = arith.constant 0 : index
    %29 = tpu.strided_load %arg0[%c34, %c0_18] {strides = array<i32: 2, 1>} : memref<64x128xf32, #tpu.memory_space<vmem>>, vector<14x128xf32>
    %c35 = arith.constant 35 : index
    %c0_19 = arith.constant 0 : index
    %30 = tpu.strided_load %arg0[%c35, %c0_19] {strides = array<i32: 2, 1>} : memref<64x128xf32, #tpu.memory_space<vmem>>, vector<14x128xf32>
    %c36 = arith.constant 36 : index
    %c0_20 = arith.constant 0 : index
    %31 = tpu.strided_load %arg0[%c36, %c0_20] {strides = array<i32: 2, 1>} : memref<64x128xf32, #tpu.memory_space<vmem>>, vector<14x128xf32>
    %32 = tpu.concatenate %27, %28, %29, %30, %31 in 1 : vector<14x128xf32>, vector<14x128xf32>, vector<14x128xf32>, vector<14x128xf32>, vector<14x128xf32> -> vector<14x640xf32>
    %33 = arith.truncf %32 : vector<14x640xf32> to vector<14x640xbf16>
    %cst_21 = arith.constant dense<0.000000e+00> : vector<14x128xf32>
    %34 = tpu.matmul %33, %0, %cst_21 {dimension_numbers = #tpu.dot_dimension_numbers<[1], [0], [0], [1], [0, 0, 1, 1], [], []>} : vector<14x640xbf16>, vector<640x128xbf16>, vector<14x128xf32> -> vector<14x128xf32>
    %35 = vector.broadcast %1 : vector<1x128xf32> to vector<14x128xf32>
    %36 = arith.addf %34, %35 : vector<14x128xf32>
    %cst_22 = arith.constant -1.000000e-03 : f32
    %37 = vector.broadcast %cst_22 : f32 to vector<14x128xf32>
    %38 = arith.cmpf ogt, %36, %37 : vector<14x128xf32>
    %cst_23 = arith.constant 5.000000e-01 : f32
    %39 = vector.broadcast %cst_23 : f32 to vector<14x128xf32>
    %40 = arith.mulf %39, %36 : vector<14x128xf32>
    %cst_24 = arith.constant 1.000000e+00 : f32
    %41 = vector.broadcast %cst_24 : f32 to vector<14x128xf32>
    %42 = arith.addf %41, %40 : vector<14x128xf32>
    %43 = arith.mulf %36, %42 : vector<14x128xf32>
    %44 = math.exp %36 : vector<14x128xf32>
    %cst_25 = arith.constant 1.000000e+00 : f32
    %45 = vector.broadcast %cst_25 : f32 to vector<14x128xf32>
    %46 = arith.subf %44, %45 : vector<14x128xf32>
    %47 = arith.select %38, %43, %46 : vector<14x128xi1>, vector<14x128xf32>
    %cst_26 = arith.constant 0.000000e+00 : f32
    %48 = vector.broadcast %cst_26 : f32 to vector<14x128xf32>
    %49 = arith.cmpf ogt, %36, %48 : vector<14x128xf32>
    %50 = arith.select %49, %36, %47 : vector<14x128xi1>, vector<14x128xf32>
    %c14 = arith.constant 14 : index
    %c0_27 = arith.constant 0 : index
    %51 = vector.load %arg6[%c14, %c0_27] : memref<28x128xf32, #tpu.memory_space<vmem>>, vector<14x128xf32>
    tpu.vector_store %arg6[%c14, %c0_27], %50 {strides = array<i32>} : memref<28x128xf32, #tpu.memory_space<vmem>>, vector<14x128xf32>,
    %c640 = arith.constant 640 : index
    %c0_28 = arith.constant 0 : index
    %52 = vector.load %arg1[%c640, %c0_28] : memref<2304x128xbf16, #tpu.memory_space<vmem>>, vector<640x128xbf16>
    %c1_29 = arith.constant 1 : index
    %c0_30 = arith.constant 0 : index
    %53 = vector.load %arg2[%c1_29, %c0_30] : memref<6x128xf32, #tpu.memory_space<vmem>>, vector<1x128xf32>
    %c0_31 = arith.constant 0 : index
    %c0_32 = arith.constant 0 : index
    %54 = tpu.strided_load %arg6[%c0_31, %c0_32] {strides = array<i32: 2, 1>} : memref<28x128xf32, #tpu.memory_space<vmem>>, vector<5x128xf32>
    %c1_33 = arith.constant 1 : index
    %c0_34 = arith.constant 0 : index
    %55 = tpu.strided_load %arg6[%c1_33, %c0_34] {strides = array<i32: 2, 1>} : memref<28x128xf32, #tpu.memory_space<vmem>>, vector<5x128xf32>
    %c2_35 = arith.constant 2 : index
    %c0_36 = arith.constant 0 : index
    %56 = tpu.strided_load %arg6[%c2_35, %c0_36] {strides = array<i32: 2, 1>} : memref<28x128xf32, #tpu.memory_space<vmem>>, vector<5x128xf32>
    %c3_37 = arith.constant 3 : index
    %c0_38 = arith.constant 0 : index
    %57 = tpu.strided_load %arg6[%c3_37, %c0_38] {strides = array<i32: 2, 1>} : memref<28x128xf32, #tpu.memory_space<vmem>>, vector<5x128xf32>
    %c4_39 = arith.constant 4 : index
    %c0_40 = arith.constant 0 : index
    %58 = tpu.strided_load %arg6[%c4_39, %c0_40] {strides = array<i32: 2, 1>} : memref<28x128xf32, #tpu.memory_space<vmem>>, vector<5x128xf32>
    %59 = tpu.concatenate %54, %55, %56, %57, %58 in 1 : vector<5x128xf32>, vector<5x128xf32>, vector<5x128xf32>, vector<5x128xf32>, vector<5x128xf32> -> vector<5x640xf32>
    %60 = arith.truncf %59 : vector<5x640xf32> to vector<5x640xbf16>
    %cst_41 = arith.constant dense<0.000000e+00> : vector<5x128xf32>
    %61 = tpu.matmul %60, %52, %cst_41 {dimension_numbers = #tpu.dot_dimension_numbers<[1], [0], [0], [1], [0, 0, 1, 1], [], []>} : vector<5x640xbf16>, vector<640x128xbf16>, vector<5x128xf32> -> vector<5x128xf32>
    %62 = vector.broadcast %53 : vector<1x128xf32> to vector<5x128xf32>
    %63 = arith.addf %61, %62 : vector<5x128xf32>
    %cst_42 = arith.constant -1.000000e-03 : f32
    %64 = vector.broadcast %cst_42 : f32 to vector<5x128xf32>
    %65 = arith.cmpf ogt, %63, %64 : vector<5x128xf32>
    %cst_43 = arith.constant 5.000000e-01 : f32
    %66 = vector.broadcast %cst_43 : f32 to vector<5x128xf32>
    %67 = arith.mulf %66, %63 : vector<5x128xf32>
    %cst_44 = arith.constant 1.000000e+00 : f32
    %68 = vector.broadcast %cst_44 : f32 to vector<5x128xf32>
    %69 = arith.addf %68, %67 : vector<5x128xf32>
    %70 = arith.mulf %63, %69 : vector<5x128xf32>
    %71 = math.exp %63 : vector<5x128xf32>
    %cst_45 = arith.constant 1.000000e+00 : f32
    %72 = vector.broadcast %cst_45 : f32 to vector<5x128xf32>
    %73 = arith.subf %71, %72 : vector<5x128xf32>
    %74 = arith.select %65, %70, %73 : vector<5x128xi1>, vector<5x128xf32>
    %cst_46 = arith.constant 0.000000e+00 : f32
    %75 = vector.broadcast %cst_46 : f32 to vector<5x128xf32>
    %76 = arith.cmpf ogt, %63, %75 : vector<5x128xf32>
    %77 = arith.select %76, %63, %74 : vector<5x128xi1>, vector<5x128xf32>
    %c0_47 = arith.constant 0 : index
    %c0_48 = arith.constant 0 : index
    %78 = vector.load %arg7[%c0_47, %c0_48] : memref<10x128xf32, #tpu.memory_space<vmem>>, vector<5x128xf32>
    tpu.vector_store %arg7[%c0_47, %c0_48], %77 {strides = array<i32>} : memref<10x128xf32, #tpu.memory_space<vmem>>, vector<5x128xf32>,
    %c14_49 = arith.constant 14 : index
    %c0_50 = arith.constant 0 : index
    %79 = tpu.strided_load %arg6[%c14_49, %c0_50] {strides = array<i32: 2, 1>} : memref<28x128xf32, #tpu.memory_space<vmem>>, vector<5x128xf32>
    %c15 = arith.constant 15 : index
    %c0_51 = arith.constant 0 : index
    %80 = tpu.strided_load %arg6[%c15, %c0_51] {strides = array<i32: 2, 1>} : memref<28x128xf32, #tpu.memory_space<vmem>>, vector<5x128xf32>
    %c16 = arith.constant 16 : index
    %c0_52 = arith.constant 0 : index
    %81 = tpu.strided_load %arg6[%c16, %c0_52] {strides = array<i32: 2, 1>} : memref<28x128xf32, #tpu.memory_space<vmem>>, vector<5x128xf32>
    %c17 = arith.constant 17 : index
    %c0_53 = arith.constant 0 : index
    %82 = tpu.strided_load %arg6[%c17, %c0_53] {strides = array<i32: 2, 1>} : memref<28x128xf32, #tpu.memory_space<vmem>>, vector<5x128xf32>
    %c18 = arith.constant 18 : index
    %c0_54 = arith.constant 0 : index
    %83 = tpu.strided_load %arg6[%c18, %c0_54] {strides = array<i32: 2, 1>} : memref<28x128xf32, #tpu.memory_space<vmem>>, vector<5x128xf32>
    %84 = tpu.concatenate %79, %80, %81, %82, %83 in 1 : vector<5x128xf32>, vector<5x128xf32>, vector<5x128xf32>, vector<5x128xf32>, vector<5x128xf32> -> vector<5x640xf32>
    %85 = arith.truncf %84 : vector<5x640xf32> to vector<5x640xbf16>
    %cst_55 = arith.constant dense<0.000000e+00> : vector<5x128xf32>
    %86 = tpu.matmul %85, %52, %cst_55 {dimension_numbers = #tpu.dot_dimension_numbers<[1], [0], [0], [1], [0, 0, 1, 1], [], []>} : vector<5x640xbf16>, vector<640x128xbf16>, vector<5x128xf32> -> vector<5x128xf32>
    %87 = vector.broadcast %53 : vector<1x128xf32> to vector<5x128xf32>
    %88 = arith.addf %86, %87 : vector<5x128xf32>
    %cst_56 = arith.constant -1.000000e-03 : f32
    %89 = vector.broadcast %cst_56 : f32 to vector<5x128xf32>
    %90 = arith.cmpf ogt, %88, %89 : vector<5x128xf32>
    %cst_57 = arith.constant 5.000000e-01 : f32
    %91 = vector.broadcast %cst_57 : f32 to vector<5x128xf32>
    %92 = arith.mulf %91, %88 : vector<5x128xf32>
    %cst_58 = arith.constant 1.000000e+00 : f32
    %93 = vector.broadcast %cst_58 : f32 to vector<5x128xf32>
    %94 = arith.addf %93, %92 : vector<5x128xf32>
    %95 = arith.mulf %88, %94 : vector<5x128xf32>
    %96 = math.exp %88 : vector<5x128xf32>
    %cst_59 = arith.constant 1.000000e+00 : f32
    %97 = vector.broadcast %cst_59 : f32 to vector<5x128xf32>
    %98 = arith.subf %96, %97 : vector<5x128xf32>
    %99 = arith.select %90, %95, %98 : vector<5x128xi1>, vector<5x128xf32>
    %cst_60 = arith.constant 0.000000e+00 : f32
    %100 = vector.broadcast %cst_60 : f32 to vector<5x128xf32>
    %101 = arith.cmpf ogt, %88, %100 : vector<5x128xf32>
    %102 = arith.select %101, %88, %99 : vector<5x128xi1>, vector<5x128xf32>
    %c5 = arith.constant 5 : index
    %c0_61 = arith.constant 0 : index
    %103 = vector.load %arg7[%c5, %c0_61] : memref<10x128xf32, #tpu.memory_space<vmem>>, vector<5x128xf32>
    tpu.vector_store %arg7[%c5, %c0_61], %102 {strides = array<i32>} : memref<10x128xf32, #tpu.memory_space<vmem>>, vector<5x128xf32>,
    %c1280 = arith.constant 1280 : index
    %c0_62 = arith.constant 0 : index
    %104 = vector.load %arg1[%c1280, %c0_62] : memref<2304x128xbf16, #tpu.memory_space<vmem>>, vector<384x128xbf16>
    %c2_63 = arith.constant 2 : index
    %c0_64 = arith.constant 0 : index
    %105 = vector.load %arg2[%c2_63, %c0_64] : memref<6x128xf32, #tpu.memory_space<vmem>>, vector<1x128xf32>
    %c0_65 = arith.constant 0 : index
    %c0_66 = arith.constant 0 : index
    %106 = vector.load %arg7[%c0_65, %c0_66] : memref<10x128xf32, #tpu.memory_space<vmem>>, vector<3x128xf32>
    %c1_67 = arith.constant 1 : index
    %c0_68 = arith.constant 0 : index
    %107 = vector.load %arg7[%c1_67, %c0_68] : memref<10x128xf32, #tpu.memory_space<vmem>>, vector<3x128xf32>
    %c2_69 = arith.constant 2 : index
    %c0_70 = arith.constant 0 : index
    %108 = vector.load %arg7[%c2_69, %c0_70] : memref<10x128xf32, #tpu.memory_space<vmem>>, vector<3x128xf32>
    %109 = tpu.concatenate %106, %107, %108 in 1 : vector<3x128xf32>, vector<3x128xf32>, vector<3x128xf32> -> vector<3x384xf32>
    %110 = arith.truncf %109 : vector<3x384xf32> to vector<3x384xbf16>
    %cst_71 = arith.constant dense<0.000000e+00> : vector<3x128xf32>
    %111 = tpu.matmul %110, %104, %cst_71 {dimension_numbers = #tpu.dot_dimension_numbers<[1], [0], [0], [1], [0, 0, 1, 1], [], []>} : vector<3x384xbf16>, vector<384x128xbf16>, vector<3x128xf32> -> vector<3x128xf32>
    %112 = vector.broadcast %105 : vector<1x128xf32> to vector<3x128xf32>
    %113 = arith.addf %111, %112 : vector<3x128xf32>
    %cst_72 = arith.constant -1.000000e-03 : f32
    %114 = vector.broadcast %cst_72 : f32 to vector<3x128xf32>
    %115 = arith.cmpf ogt, %113, %114 : vector<3x128xf32>
    %cst_73 = arith.constant 5.000000e-01 : f32
    %116 = vector.broadcast %cst_73 : f32 to vector<3x128xf32>
    %117 = arith.mulf %116, %113 : vector<3x128xf32>
    %cst_74 = arith.constant 1.000000e+00 : f32
    %118 = vector.broadcast %cst_74 : f32 to vector<3x128xf32>
    %119 = arith.addf %118, %117 : vector<3x128xf32>
    %120 = arith.mulf %113, %119 : vector<3x128xf32>
    %121 = math.exp %113 : vector<3x128xf32>
    %cst_75 = arith.constant 1.000000e+00 : f32
    %122 = vector.broadcast %cst_75 : f32 to vector<3x128xf32>
    %123 = arith.subf %121, %122 : vector<3x128xf32>
    %124 = arith.select %115, %120, %123 : vector<3x128xi1>, vector<3x128xf32>
    %cst_76 = arith.constant 0.000000e+00 : f32
    %125 = vector.broadcast %cst_76 : f32 to vector<3x128xf32>
    %126 = arith.cmpf ogt, %113, %125 : vector<3x128xf32>
    %127 = arith.select %126, %113, %124 : vector<3x128xi1>, vector<3x128xf32>
    %128 = vector.extract_strided_slice %127 {offsets = [0, 0], sizes = [1, 128], strides = [1, 1]} : vector<3x128xf32> to vector<1x128xf32>
    %c0_77 = arith.constant 0 : index
    %c0_78 = arith.constant 0 : index
    %129 = vector.load %arg8[%c0_77, %c0_78] : memref<2x384xf32, #tpu.memory_space<vmem>>, vector<1x128xf32>
    tpu.vector_store %arg8[%c0_77, %c0_78], %128 {strides = array<i32>} : memref<2x384xf32, #tpu.memory_space<vmem>>, vector<1x128xf32>,
    %130 = vector.extract_strided_slice %127 {offsets = [1, 0], sizes = [1, 128], strides = [1, 1]} : vector<3x128xf32> to vector<1x128xf32>
    %c0_79 = arith.constant 0 : index
    %c128 = arith.constant 128 : index
    %131 = vector.load %arg8[%c0_79, %c128] : memref<2x384xf32, #tpu.memory_space<vmem>>, vector<1x128xf32>
    tpu.vector_store %arg8[%c0_79, %c128], %130 {strides = array<i32>} : memref<2x384xf32, #tpu.memory_space<vmem>>, vector<1x128xf32>,
    %132 = vector.extract_strided_slice %127 {offsets = [2, 0], sizes = [1, 128], strides = [1, 1]} : vector<3x128xf32> to vector<1x128xf32>
    %c0_80 = arith.constant 0 : index
    %c256 = arith.constant 256 : index
    %133 = vector.load %arg8[%c0_80, %c256] : memref<2x384xf32, #tpu.memory_space<vmem>>, vector<1x128xf32>
    tpu.vector_store %arg8[%c0_80, %c256], %132 {strides = array<i32>} : memref<2x384xf32, #tpu.memory_space<vmem>>, vector<1x128xf32>,
    %c5_81 = arith.constant 5 : index
    %c0_82 = arith.constant 0 : index
    %134 = vector.load %arg7[%c5_81, %c0_82] : memref<10x128xf32, #tpu.memory_space<vmem>>, vector<3x128xf32>
    %c6 = arith.constant 6 : index
    %c0_83 = arith.constant 0 : index
    %135 = vector.load %arg7[%c6, %c0_83] : memref<10x128xf32, #tpu.memory_space<vmem>>, vector<3x128xf32>
    %c7 = arith.constant 7 : index
    %c0_84 = arith.constant 0 : index
    %136 = vector.load %arg7[%c7, %c0_84] : memref<10x128xf32, #tpu.memory_space<vmem>>, vector<3x128xf32>
    %137 = tpu.concatenate %134, %135, %136 in 1 : vector<3x128xf32>, vector<3x128xf32>, vector<3x128xf32> -> vector<3x384xf32>
    %138 = arith.truncf %137 : vector<3x384xf32> to vector<3x384xbf16>
    %cst_85 = arith.constant dense<0.000000e+00> : vector<3x128xf32>
    %139 = tpu.matmul %138, %104, %cst_85 {dimension_numbers = #tpu.dot_dimension_numbers<[1], [0], [0], [1], [0, 0, 1, 1], [], []>} : vector<3x384xbf16>, vector<384x128xbf16>, vector<3x128xf32> -> vector<3x128xf32>
    %140 = vector.broadcast %105 : vector<1x128xf32> to vector<3x128xf32>
    %141 = arith.addf %139, %140 : vector<3x128xf32>
    %cst_86 = arith.constant -1.000000e-03 : f32
    %142 = vector.broadcast %cst_86 : f32 to vector<3x128xf32>
    %143 = arith.cmpf ogt, %141, %142 : vector<3x128xf32>
    %cst_87 = arith.constant 5.000000e-01 : f32
    %144 = vector.broadcast %cst_87 : f32 to vector<3x128xf32>
    %145 = arith.mulf %144, %141 : vector<3x128xf32>
    %cst_88 = arith.constant 1.000000e+00 : f32
    %146 = vector.broadcast %cst_88 : f32 to vector<3x128xf32>
    %147 = arith.addf %146, %145 : vector<3x128xf32>
    %148 = arith.mulf %141, %147 : vector<3x128xf32>
    %149 = math.exp %141 : vector<3x128xf32>
    %cst_89 = arith.constant 1.000000e+00 : f32
    %150 = vector.broadcast %cst_89 : f32 to vector<3x128xf32>
    %151 = arith.subf %149, %150 : vector<3x128xf32>
    %152 = arith.select %143, %148, %151 : vector<3x128xi1>, vector<3x128xf32>
    %cst_90 = arith.constant 0.000000e+00 : f32
    %153 = vector.broadcast %cst_90 : f32 to vector<3x128xf32>
    %154 = arith.cmpf ogt, %141, %153 : vector<3x128xf32>
    %155 = arith.select %154, %141, %152 : vector<3x128xi1>, vector<3x128xf32>
    %156 = vector.extract_strided_slice %155 {offsets = [0, 0], sizes = [1, 128], strides = [1, 1]} : vector<3x128xf32> to vector<1x128xf32>
    %c1_91 = arith.constant 1 : index
    %c0_92 = arith.constant 0 : index
    %157 = vector.load %arg8[%c1_91, %c0_92] : memref<2x384xf32, #tpu.memory_space<vmem>>, vector<1x128xf32>
    tpu.vector_store %arg8[%c1_91, %c0_92], %156 {strides = array<i32>} : memref<2x384xf32, #tpu.memory_space<vmem>>, vector<1x128xf32>,
    %158 = vector.extract_strided_slice %155 {offsets = [1, 0], sizes = [1, 128], strides = [1, 1]} : vector<3x128xf32> to vector<1x128xf32>
    %c1_93 = arith.constant 1 : index
    %c128_94 = arith.constant 128 : index
    %159 = vector.load %arg8[%c1_93, %c128_94] : memref<2x384xf32, #tpu.memory_space<vmem>>, vector<1x128xf32>
    tpu.vector_store %arg8[%c1_93, %c128_94], %158 {strides = array<i32>} : memref<2x384xf32, #tpu.memory_space<vmem>>, vector<1x128xf32>,
    %160 = vector.extract_strided_slice %155 {offsets = [2, 0], sizes = [1, 128], strides = [1, 1]} : vector<3x128xf32> to vector<1x128xf32>
    %c1_95 = arith.constant 1 : index
    %c256_96 = arith.constant 256 : index
    %161 = vector.load %arg8[%c1_95, %c256_96] : memref<2x384xf32, #tpu.memory_space<vmem>>, vector<1x128xf32>
    tpu.vector_store %arg8[%c1_95, %c256_96], %160 {strides = array<i32>} : memref<2x384xf32, #tpu.memory_space<vmem>>, vector<1x128xf32>,
    %c0_97 = arith.constant 0 : index
    %c0_98 = arith.constant 0 : index
    %162 = vector.load %arg8[%c0_97, %c0_98] : memref<2x384xf32, #tpu.memory_space<vmem>>, vector<2x384xf32>
    %163 = arith.truncf %162 : vector<2x384xf32> to vector<2x384xbf16>
    %c1664 = arith.constant 1664 : index
    %c0_99 = arith.constant 0 : index
    %164 = vector.load %arg1[%c1664, %c0_99] : memref<2304x128xbf16, #tpu.memory_space<vmem>>, vector<384x128xbf16>
    %cst_100 = arith.constant dense<0.000000e+00> : vector<2x128xf32>
    %165 = tpu.matmul %163, %164, %cst_100 {dimension_numbers = #tpu.dot_dimension_numbers<[1], [0], [0], [1], [0, 0, 1, 1], [], []>} : vector<2x384xbf16>, vector<384x128xbf16>, vector<2x128xf32> -> vector<2x128xf32>
    %c3_101 = arith.constant 3 : index
    %c0_102 = arith.constant 0 : index
    %166 = vector.load %arg2[%c3_101, %c0_102] : memref<6x128xf32, #tpu.memory_space<vmem>>, vector<1x128xf32>
    %167 = vector.broadcast %166 : vector<1x128xf32> to vector<2x128xf32>
    %168 = arith.addf %165, %167 : vector<2x128xf32>
    %cst_103 = arith.constant -1.000000e-03 : f32
    %169 = vector.broadcast %cst_103 : f32 to vector<2x128xf32>
    %170 = arith.cmpf ogt, %168, %169 : vector<2x128xf32>
    %cst_104 = arith.constant 5.000000e-01 : f32
    %171 = vector.broadcast %cst_104 : f32 to vector<2x128xf32>
    %172 = arith.mulf %171, %168 : vector<2x128xf32>
    %cst_105 = arith.constant 1.000000e+00 : f32
    %173 = vector.broadcast %cst_105 : f32 to vector<2x128xf32>
    %174 = arith.addf %173, %172 : vector<2x128xf32>
    %175 = arith.mulf %168, %174 : vector<2x128xf32>
    %176 = math.exp %168 : vector<2x128xf32>
    %cst_106 = arith.constant 1.000000e+00 : f32
    %177 = vector.broadcast %cst_106 : f32 to vector<2x128xf32>
    %178 = arith.subf %176, %177 : vector<2x128xf32>
    %179 = arith.select %170, %175, %178 : vector<2x128xi1>, vector<2x128xf32>
    %cst_107 = arith.constant 0.000000e+00 : f32
    %180 = vector.broadcast %cst_107 : f32 to vector<2x128xf32>
    %181 = arith.cmpf ogt, %168, %180 : vector<2x128xf32>
    %182 = arith.select %181, %168, %179 : vector<2x128xi1>, vector<2x128xf32>
    %183 = arith.truncf %182 : vector<2x128xf32> to vector<2x128xbf16>
    %c2048 = arith.constant 2048 : index
    %c0_108 = arith.constant 0 : index
    %184 = vector.load %arg1[%c2048, %c0_108] : memref<2304x128xbf16, #tpu.memory_space<vmem>>, vector<128x128xbf16>
    %cst_109 = arith.constant dense<0.000000e+00> : vector<2x128xf32>
    %185 = tpu.matmul %183, %184, %cst_109 {dimension_numbers = #tpu.dot_dimension_numbers<[1], [0], [0], [1], [0, 0, 1, 1], [], []>} : vector<2x128xbf16>, vector<128x128xbf16>, vector<2x128xf32> -> vector<2x128xf32>
    %c4_110 = arith.constant 4 : index
    %c0_111 = arith.constant 0 : index
    %186 = vector.load %arg2[%c4_110, %c0_111] : memref<6x128xf32, #tpu.memory_space<vmem>>, vector<1x128xf32>
    %187 = vector.broadcast %186 : vector<1x128xf32> to vector<2x128xf32>
    %188 = arith.addf %185, %187 : vector<2x128xf32>
    %cst_112 = arith.constant -1.000000e-03 : f32
    %189 = vector.broadcast %cst_112 : f32 to vector<2x128xf32>
    %190 = arith.cmpf ogt, %188, %189 : vector<2x128xf32>
    %cst_113 = arith.constant 5.000000e-01 : f32
    %191 = vector.broadcast %cst_113 : f32 to vector<2x128xf32>
    %192 = arith.mulf %191, %188 : vector<2x128xf32>
    %cst_114 = arith.constant 1.000000e+00 : f32
    %193 = vector.broadcast %cst_114 : f32 to vector<2x128xf32>
    %194 = arith.addf %193, %192 : vector<2x128xf32>
    %195 = arith.mulf %188, %194 : vector<2x128xf32>
    %196 = math.exp %188 : vector<2x128xf32>
    %cst_115 = arith.constant 1.000000e+00 : f32
    %197 = vector.broadcast %cst_115 : f32 to vector<2x128xf32>
    %198 = arith.subf %196, %197 : vector<2x128xf32>
    %199 = arith.select %190, %195, %198 : vector<2x128xi1>, vector<2x128xf32>
    %cst_116 = arith.constant 0.000000e+00 : f32
    %200 = vector.broadcast %cst_116 : f32 to vector<2x128xf32>
    %201 = arith.cmpf ogt, %188, %200 : vector<2x128xf32>
    %202 = arith.select %201, %188, %199 : vector<2x128xi1>, vector<2x128xf32>
    %203 = arith.truncf %202 : vector<2x128xf32> to vector<2x128xbf16>
    %c2176 = arith.constant 2176 : index
    %c0_117 = arith.constant 0 : index
    %204 = vector.load %arg1[%c2176, %c0_117] : memref<2304x128xbf16, #tpu.memory_space<vmem>>, vector<128x128xbf16>
    %cst_118 = arith.constant dense<0.000000e+00> : vector<2x128xf32>
    %205 = tpu.matmul %203, %204, %cst_118 {dimension_numbers = #tpu.dot_dimension_numbers<[1], [0], [0], [1], [0, 0, 1, 1], [], []>} : vector<2x128xbf16>, vector<128x128xbf16>, vector<2x128xf32> -> vector<2x128xf32>
    %c5_119 = arith.constant 5 : index
    %c0_120 = arith.constant 0 : index
    %206 = vector.load %arg2[%c5_119, %c0_120] : memref<6x128xf32, #tpu.memory_space<vmem>>, vector<1x128xf32>
    %207 = vector.broadcast %206 : vector<1x128xf32> to vector<2x128xf32>
    %208 = arith.addf %205, %207 : vector<2x128xf32>
    %c0_121 = arith.constant 0 : index
    %c0_122 = arith.constant 0 : index
    %209 = vector.load %arg5[%c0_121, %c0_122] : memref<2x128xf32, #tpu.memory_space<vmem>>, vector<2x128xf32>
    tpu.vector_store %arg5[%c0_121, %c0_122], %208 {strides = array<i32>} : memref<2x128xf32, #tpu.memory_space<vmem>>, vector<2x128xf32>,
    %210 = arith.truncf %208 : vector<2x128xf32> to vector<2x128xbf16>
    %c0_123 = arith.constant 0 : index
    %c0_124 = arith.constant 0 : index
    %211 = vector.load %arg3[%c0_123, %c0_124] : memref<128x768xbf16, #tpu.memory_space<vmem>>, vector<128x768xbf16>
    %cst_125 = arith.constant dense<0.000000e+00> : vector<2x768xf32>
    %212 = tpu.matmul %210, %211, %cst_125 {dimension_numbers = #tpu.dot_dimension_numbers<[1], [0], [0], [1], [0, 0, 1, 1], [], []>} : vector<2x128xbf16>, vector<128x768xbf16>, vector<2x768xf32> -> vector<2x768xf32>
    %c0_126 = arith.constant 0 : index
    %c0_127 = arith.constant 0 : index
    %213 = vector.load %arg4[%c0_126, %c0_127] : memref<2x768xf32, #tpu.memory_space<vmem>>, vector<2x768xf32>
    tpu.vector_store %arg4[%c0_126, %c0_127], %212 {strides = array<i32>} : memref<2x768xf32, #tpu.memory_space<vmem>>, vector<2x768xf32>,
    return
  }
}

</mosaic_0001>

<bundles_post_ra>
// kernel: forward.1
= control target key start
LH: loop header
LB: loop body
LE: loop exit
PB: predicated region body
PF: predicated region fallthrough
CT: control target
= control target key end

     0   :  { %11 = vsyncpa [#allocation6], 0  ;;  %s4558_s0 = inlined_call_operand.vmem [shape: f32[64,128], index: 0, kind: input, shape index: {}]   ;;  %s4559_s1 = inlined_call_operand.hbm [shape: bf16[2304,128], index: 1, kind: input, shape index: {}]   ;;  %s4560_s2 = inlined_call_operand.vmem [shape: f32[6,128], index: 2, kind: input, shape index: {}]   ;;  %s4561_s3 = inlined_call_operand.vmem [shape: bf16[128,768], index: 3, kind: input, shape index: {}]   ;;  %s4562_s4 = inlined_call_operand.hbm [shape: f32[2,768], index: 4, kind: output, shape index: {0}]   ;;  %s4563_s5 = inlined_call_operand.hbm [shape: f32[2,128], index: 5, kind: output, shape index: {1}]  }
   0x1   :  { %12 = vsyncpa [#allocation7], 0 }
   0x2   :  { %13 = vsyncpa [#allocation10], 0  ;;  %s3800_s18 = smov [#allocation5]  }
   0x3   :  { %s21_s19 = sshll.u32 %s3800_s18, 4  ;;  %s22_s19 = int_to_ptr.vmem [resolvable:$true] %s21_s19 }
   0x4   :  { %s3742_s20 = scalar_lea.vmem %s22_s19, 18432  ;;  %p3747_p1 = scmp.lt.s32.totalorder %s22_s19, %s22_s19 }
   0x5   :  { %p3743_p0 = scmp.ne.s32.totalorder %s22_s19, %s3742_s20  ;;  %p3748_p2 = scmp.lt.s32.totalorder %s3742_s20, %s3742_s20 }
   0x7   :  { %p3749_p3 = por %p3748_p2, %p3747_p1 }
   0x9   :  { %p3750_p4 = pnand %p3749_p3, %p3743_p0 }
   0xb   :  { %3753 = shalt.err (!%p3750_p4)
}
   0xc   :  { %s3801_s21 = smov 64   ;;  %s3802_s22 = smov 4  }
   0xd   :  { %27 = dma.hbm_to_vmem [thread:$0]  %s4559_s1, 18432, %s22_s19, [#allocation6], %s3801_s21, %s3801_s21, %s3802_s22  }
   0xe   :  { %3794 = dma.done.wait [#allocation6], 18432  }
   0xf   :  { %3795 = vsyncadd [#allocation6], 4294948864  ;;  %v3842_v0 = vld [vmem:[#allocation5 + $0x78] sm:$0xff]   ;;  %v3853_v4 = vld [vmem:[#allocation5 + $0x70] sm:$0xff]   ;;  %v3803_v37 = vmov 0.0   ;;  %vm3804_vm0 = vmmov 0  }
  0x10   :  { %v3844_v1 = vld [vmem:[#allocation5 + $0xf8] sm:$0xff]   ;;  %2985 = vmatprep.subr.bf16.mxu0 %v3842_v0  ;;  %v3856_v5 = vld [vmem:[#allocation5 + $0xf0] sm:$0xff]   ;;  %v3865_v8 = vld [vmem:[#allocation5 + $0x68] sm:$0xff]   ;;  %s3807_s12 = smov [#allocation9]  }
  0x11   :  { %v3847_v2 = vld [vmem:[#allocation5 + $0x38] sm:$0xff]   ;;  %3007 = vmatprep.subr.bf16.mxu1 %v3844_v1  ;;  %v3859_v6 = vld [vmem:[#allocation5 + $0x30] sm:$0xff]   ;;  %v3868_v9 = vld [vmem:[#allocation5 + $0xe8] sm:$0xff]  }
  0x12   :  { %v3850_v3 = vld [vmem:[#allocation5 + $0xb8] sm:$0xff]   ;;  %2986 = vmatpush3.bf16.msra.mxu0 %v3847_v2  ;;  %v3862_v7 = vld [vmem:[#allocation5 + $0xb0] sm:$0xff]   ;;  %v3871_v10 = vld [vmem:[#allocation5 + $0x28] sm:$0xff]  }
  0x13   :  { %3008 = vmatpush3.bf16.msra.mxu1 %v3850_v3  ;;  %2987 = vmatprep.subr.bf16.mxu0 %v3853_v4  ;;  %v3874_v11 = vld [vmem:[#allocation5 + $0xa8] sm:$0xff]   ;;  %v3877_v12 = vld [vmem:[#allocation5 + $0x60] sm:$0xff]   ;;  %v3889_v16 = vld [vmem:[#allocation5 + $0x58] sm:$0xff]  }
  0x14   :  { %3009 = vmatprep.subr.bf16.mxu1 %v3856_v5  ;;  %v3880_v13 = vld [vmem:[#allocation5 + $0xe0] sm:$0xff]   ;;  %v3892_v17 = vld [vmem:[#allocation5 + $0xd8] sm:$0xff]   ;;  %v3901_v20 = vld [vmem:[#allocation5 + $0x50] sm:$0xff]  }
  0x15   :  { %v3883_v14 = vld [vmem:[#allocation5 + $0x20] sm:$0xff]   ;;  %v3895_v18 = vld [vmem:[#allocation5 + $0x18] sm:$0xff]   ;;  %v3904_v21 = vld [vmem:[#allocation5 + $0xd0] sm:$0xff]  }
  0x16   :  { %2988 = vmatpush3.bf16.msra.mxu0 %v3859_v6  ;;  %v3886_v15 = vld [vmem:[#allocation5 + $0xa0] sm:$0xff]   ;;  %v3898_v19 = vld [vmem:[#allocation5 + $0x98] sm:$0xff]   ;;  %v3907_v22 = vld [vmem:[#allocation5 + $0x10] sm:$0xff]  }
  0x17   :  { %3010 = vmatpush3.bf16.msra.mxu1 %v3862_v7  ;;  %2989 = vmatprep.subr.bf16.mxu0 %v3865_v8  ;;  %v3910_v23 = vld [vmem:[#allocation5 + $0x90] sm:$0xff]   ;;  %v3913_v24 = vld [vmem:[#allocation5 + $0x48] sm:$0xff]   ;;  %v3925_v28 = vld [vmem:[#allocation5 + $0x40] sm:$0xff]  }
  0x18   :  { %3011 = vmatprep.subr.bf16.mxu1 %v3868_v9  ;;  %v3916_v25 = vld [vmem:[#allocation5 + $0xc8] sm:$0xff]   ;;  %v3928_v29 = vld [vmem:[#allocation5 + $0xc0] sm:$0xff]   ;;  %v3951_v38 = vld [vmem:[#allocation5 + $0x138] sm:$0xff]  }
  0x19   :  { %v3919_v26 = vld [vmem:[#allocation5 + $0x8] sm:$0xff]   ;;  %v3931_v30 = vld [vmem:[#allocation5] sm:$0xff]   ;;  %v3966_v45 = vld [vmem:[#allocation5 + $0x130] sm:$0xff]  }
  0x1a   :  { %2990 = vmatpush3.bf16.msra.mxu0 %v3871_v10  ;;  %v3922_v27 = vld [vmem:[#allocation5 + $0x88] sm:$0xff]   ;;  %v3934_v31 = vld [vmem:[#allocation5 + $0x80] sm:$0xff]   ;;  %v3533_v52 = vld [vmem:[#allocation5 + $0x118] sm:$0xff]  }
  0x1b   :  { %3012 = vmatpush3.bf16.msra.mxu1 %v3874_v11  ;;  %2991 = vmatprep.subr.bf16.mxu0 %v3877_v12  ;;  %v2756_v32 = vld [vmem:[%s4558_s0 + $0x1] ss:$2 sm:$0xff]  ;;  %v2757_v33 = vld [vmem:[%s4558_s0 + $0x11] ss:$2 sm:$0x3f] }
  0x1c   :  { %3013 = vmatprep.subr.bf16.mxu1 %v3880_v13  ;;  %v137_v34 = vpack.c.bf16 %v2757_v33, %v2756_v32  ;;  %v117_v35 = vld [vmem:[%s4558_s0] ss:$2 sm:$0xff]  ;;  %v2755_v36 = vld [vmem:[%s4558_s0 + $0x10] ss:$2 sm:$0x3f] }
  0x1d   :  { %v136_v39 = vpack.c.bf16 %v2755_v36, %v117_v35  ;;  %v2760_v40 = vld [vmem:[%s4558_s0 + $0x3] ss:$2 sm:$0xff]  ;;  %v2761_v41 = vld [vmem:[%s4558_s0 + $0x13] ss:$2 sm:$0x3f] }
  0x1e   :  { %2992 = vmatpush3.bf16.msra.mxu0 %v3883_v14  ;;  %417 = vmatprep.mubr.bf16.mxu0 %v137_v34  ;;  %v139_v42 = vpack.c.bf16 %v2761_v41, %v2760_v40  ;;  %v2758_v43 = vld [vmem:[%s4558_s0 + $0x2] ss:$2 sm:$0xff]  ;;  %v2759_v44 = vld [vmem:[%s4558_s0 + $0x12] ss:$2 sm:$0x3f] }
  0x1f   :  { %3014 = vmatpush3.bf16.msra.mxu1 %v3886_v15  ;;  %2993 = vmatprep.subr.bf16.mxu0 %v3889_v16  ;;  %v138_v46 = vpack.c.bf16 %v2759_v44, %v2758_v43  ;;  %v3531_v47 = vld [vmem:[#allocation5 + $0x128] sm:$0xff]   ;;  %v2810_v49 = vld [vmem:[%s4558_s0 + $0x31] ss:$2 sm:$0x3f]  ;;  %v3534_v53 = vld [vmem:[#allocation5 + $0x110] sm:$0xff]  }
  0x20   :  { %3015 = vmatprep.subr.bf16.mxu1 %v3892_v17  ;;  %458 = vmatprep.mubr.bf16.mxu1 %v139_v42  ;;  %v2809_v48 = vld [vmem:[%s4558_s0 + $0x21] ss:$2 sm:$0xff]  ;;  %v3532_v50 = vld [vmem:[#allocation5 + $0x120] sm:$0xff]   ;;  %v2762_v56 = vld [vmem:[%s4558_s0 + $0x4] ss:$2 sm:$0xff] }
  0x21   :  { %v551_v51 = vpack.c.bf16 %v2810_v49, %v2809_v48  ;;  %v3535_v54 = vld [vmem:[#allocation5 + $0x108] sm:$0xff]   ;;  %v3536_v55 = vld [vmem:[#allocation5 + $0x100] sm:$0xff]  }
  0x22   :  { %2994 = vmatpush3.bf16.msra.mxu0 %v3895_v18  ;;  %v2763_v57 = vld [vmem:[%s4558_s0 + $0x14] ss:$2 sm:$0x3f]  ;;  %v2813_v58 = vld [vmem:[%s4558_s0 + $0x23] ss:$2 sm:$0xff] }
  0x23   :  { %3016 = vmatpush3.bf16.msra.mxu1 %v3898_v19  ;;  %2995 = vmatprep.subr.bf16.mxu0 %v3901_v20  ;;  %v2814_v59 = vld [vmem:[%s4558_s0 + $0x33] ss:$2 sm:$0x3f]  ;;  %v2807_v60 = vld [vmem:[%s4558_s0 + $0x20] ss:$2 sm:$0xff]  ;;  %v140_v62 = vpack.c.bf16 %v2763_v57, %v2762_v56 }
  0x24   :  { %3017 = vmatprep.subr.bf16.mxu1 %v3904_v21  ;;  %v2808_v61 = vld [vmem:[%s4558_s0 + $0x30] ss:$2 sm:$0x3f]  ;;  %v553_v63 = vpack.c.bf16 %v2814_v59, %v2813_v58  ;;  %v4131_v32 = vld [vmem:[#allocation5 + $0x148] sm:$0xff]  }
  0x25   :  { %v4133_v33 = vld [vmem:[#allocation5 + $0x208] sm:$0xff]   ;;  %v4142_v35 = vld [vmem:[#allocation5 + $0x180] sm:$0xff]  }
  0x26   :  { %2996 = vmatpush3.bf16.msra.mxu0 %v3907_v22  ;;  %v4136_v34 = vld [vmem:[#allocation5 + $0x1c8] sm:$0xff]   ;;  %v4144_v36 = vld [vmem:[#allocation5 + $0x140] sm:$0xff]  }
  0x27   :  { %3018 = vmatpush3.bf16.msra.mxu1 %v3910_v23  ;;  %2997 = vmatprep.subr.bf16.mxu0 %v3913_v24 }
  0x28   :  { %3019 = vmatprep.subr.bf16.mxu1 %v3916_v25 }
  0x2a   :  { %2998 = vmatpush3.bf16.msra.mxu0 %v3919_v26 }
  0x2b   :  { %3020 = vmatpush3.bf16.msra.mxu1 %v3922_v27  ;;  %2999 = vmatprep.subr.bf16.mxu0 %v3925_v28 }
  0x2c   :  { %3021 = vmatprep.subr.bf16.mxu1 %v3928_v29 }
  0x2e   :  { %3000 = vmatpush3.bf16.msra.mxu0 %v3931_v30 }
  0x2f   :  { %3022 = vmatpush3.bf16.msra.mxu1 %v3934_v31  ;;  %3308 = vmatprep.subr.bf16.mxu0 %v3803_v37 }
  0x30   :  { %3038 = vmatprep.subr.bf16.mxu1 %v3842_v0  ;;  %v550_v0 = vpack.c.bf16 %v2808_v61, %v2807_v60 }
  0x31   :  { %418 = vmatmul.mubr.bf16.vlgmr.msra.gmra.mxu0 %v136_v39  ;;  %v4149_v39 = vld [vmem:[#allocation5 + $0x1c0] sm:$0xff]  }
  0x32   :  { %3309 = vmatpush3.bf16.msra.mxu0 %v3951_v38  ;;  %459 = vmatmul.mubr.bf16.vlgmr.msra.gmra.mxu1 %v138_v46  ;;  %v4159_v46 = vld [vmem:[%s4560_s2] ss:$0 sm:$0xff] }
  0x33   :  { %3310 = vmatprep.subr.bf16.mxu0 %v3803_v37  ;;  %3039 = vmatpush3.bf16.msra.mxu1 %v3847_v2  ;;  %v2812_v2 = vld [vmem:[%s4558_s0 + $0x32] ss:$2 sm:$0x3f] }
  0x34   :  { %3324 = vmatprep.mubr.msk.bf16.mxu0 %vm3804_vm0, %v3803_v37  ;;  %3040 = vmatprep.subr.bf16.mxu1 %v3853_v4  ;;  %v2816_v4 = vld [vmem:[%s4558_s0 + $0x34] ss:$2 sm:$0x3f] }
  0x35   :  { %587 = vmatprep.mubr.bf16.mxu1 %v551_v51 }
  0x36   :  { %3311 = vmatpush3.bf16.msra.mxu0 %v3966_v45 }
  0x37   :  { %3312 = vmatprep.subr.bf16.mxu0 %v3803_v37  ;;  %3041 = vmatpush3.bf16.msra.mxu1 %v3859_v6 }
  0x38   :  { %3042 = vmatprep.subr.bf16.mxu1 %v3865_v8  ;;  %v4060_v8 = vld [vmem:[#allocation5 + $0x178] sm:$0xff]  }
  0x3a   :  { %3313 = vmatpush3.bf16.msra.mxu0 %v3531_v47 }
  0x3b   :  { %3314 = vmatprep.subr.bf16.mxu0 %v3803_v37  ;;  %3043 = vmatpush3.bf16.msra.mxu1 %v3871_v10  ;;  %v4065_v10 = vld [vmem:[#allocation5 + $0x1f8] sm:$0xff]  }
  0x3c   :  { %3044 = vmatprep.subr.bf16.mxu1 %v3877_v12  ;;  %v4072_v12 = vld [vmem:[#allocation5 + $0x170] sm:$0xff]  }
  0x3e   :  { %3315 = vmatpush3.bf16.msra.mxu0 %v3532_v50 }
  0x3f   :  { %3316 = vmatprep.subr.bf16.mxu0 %v3803_v37  ;;  %3045 = vmatpush3.bf16.msra.mxu1 %v3883_v14  ;;  %v4077_v14 = vld [vmem:[#allocation5 + $0x1f0] sm:$0xff]  }
  0x40   :  { %3046 = vmatprep.subr.bf16.mxu1 %v3889_v16  ;;  %v4084_v16 = vld [vmem:[#allocation5 + $0x168] sm:$0xff]  }
  0x42   :  { %3317 = vmatpush3.bf16.msra.mxu0 %v3533_v52 }
  0x43   :  { %3318 = vmatprep.subr.bf16.mxu0 %v3803_v37  ;;  %3047 = vmatpush3.bf16.msra.mxu1 %v3895_v18  ;;  %v4089_v18 = vld [vmem:[#allocation5 + $0x1e8] sm:$0xff]  }
  0x44   :  { %3048 = vmatprep.subr.bf16.mxu1 %v3901_v20  ;;  %v4096_v20 = vld [vmem:[#allocation5 + $0x160] sm:$0xff]  }
  0x46   :  { %3319 = vmatpush3.bf16.msra.mxu0 %v3534_v53 }
  0x47   :  { %3320 = vmatprep.subr.bf16.mxu0 %v3803_v37  ;;  %3049 = vmatpush3.bf16.msra.mxu1 %v3907_v22  ;;  %v4101_v22 = vld [vmem:[#allocation5 + $0x1e0] sm:$0xff]  }
  0x48   :  { %3050 = vmatprep.subr.bf16.mxu1 %v3913_v24  ;;  %v4108_v24 = vld [vmem:[#allocation5 + $0x158] sm:$0xff]  }
  0x4a   :  { %3321 = vmatpush3.bf16.msra.mxu0 %v3535_v54 }
  0x4b   :  { %3322 = vmatprep.subr.bf16.mxu0 %v3803_v37  ;;  %3051 = vmatpush3.bf16.msra.mxu1 %v3919_v26  ;;  %v4113_v26 = vld [vmem:[#allocation5 + $0x1d8] sm:$0xff]  }
  0x4c   :  { %3052 = vmatprep.subr.bf16.mxu1 %v3925_v28  ;;  %v4120_v28 = vld [vmem:[#allocation5 + $0x150] sm:$0xff]  }
  0x4e   :  { %3323 = vmatpush3.bf16.msra.mxu0 %v3536_v55 }
  0x4f   :  { %3060 = vmatprep.subr.bf16.mxu0 %v3844_v1  ;;  %3053 = vmatpush3.bf16.msra.mxu1 %v3931_v30  ;;  %v2811_v1 = vld [vmem:[%s4558_s0 + $0x22] ss:$2 sm:$0xff] }
  0x50   :  { %3328 = vmatprep.subr.bf16.mxu1 %v3803_v37  ;;  %v4125_v30 = vld [vmem:[#allocation5 + $0x1d0] sm:$0xff]  }
  0x51   :  { %3325 = vmatmul.mubr.bf16.vlgmr.msra.gmra.mxu0 %v140_v62 }
  0x52   :  { %3061 = vmatpush3.bf16.msra.mxu0 %v3850_v3  ;;  %628 = vmatprep.mubr.bf16.mxu0 %v553_v63  ;;  %v2815_v3 = vld [vmem:[%s4558_s0 + $0x24] ss:$2 sm:$0xff]  ;;  %s2742_s0 = sshll.u32 %s3807_s12, 4  ;;  %s2743_s0 = int_to_ptr.vmem [resolvable:$true] %s2742_s0 }
  0x53   :  { %588 = vmatmul.mubr.bf16.vlgmr.msra.gmra.mxu1 %v550_v0  ;;  %3062 = vmatprep.subr.bf16.mxu0 %v3856_v5  ;;  %v552_v5 = vpack.c.bf16 %v2812_v2, %v2811_v1  ;;  %v554_v6 = vpack.c.bf16 %v2816_v4, %v2815_v3  ;;  %s3754_s13 = scalar_lea.vmem %s2743_s0, 32  ;;  %p3759_p6 = scmp.lt.s32.totalorder %s2743_s0, %s2743_s0 }
  0x54   :  { %3329 = vmatpush3.bf16.msra.mxu1 %v3951_v38  ;;  %3344 = vmatprep.mubr.msk.bf16.mxu1 %vm3804_vm0, %v3803_v37  ;;  %v4146_v38 = vld [vmem:[#allocation5 + $0x200] sm:$0xff]   ;;  %p3755_p5 = scmp.ne.s32.totalorder %s2743_s0, %s3754_s13  ;;  %p3760_p7 = scmp.lt.s32.totalorder %s3754_s13, %s3754_s13 }
  0x55   :  { %3330 = vmatprep.subr.bf16.mxu1 %v3803_v37 }
  0x56   :  { %3063 = vmatpush3.bf16.msra.mxu0 %v3862_v7  ;;  %v4058_v7 = vld [vmem:[#allocation5 + $0x1b8] sm:$0xff]   ;;  %p3761_p8 = por %p3760_p7, %p3759_p6 }
  0x57   :  { %3064 = vmatprep.subr.bf16.mxu0 %v3868_v9  ;;  %v4062_v9 = vld [vmem:[#allocation5 + $0x238] sm:$0xff]  }
  0x58   :  { %3331 = vmatpush3.bf16.msra.mxu1 %v3966_v45  ;;  %p3762_p9 = pnand %p3761_p8, %p3755_p5 }
  0x59   :  { %3332 = vmatprep.subr.bf16.mxu1 %v3803_v37 }
  0x5a   :  { %3065 = vmatpush3.bf16.msra.mxu0 %v3874_v11  ;;  %v4070_v11 = vld [vmem:[#allocation5 + $0x1b0] sm:$0xff]  }
  0x5b   :  { %3066 = vmatprep.subr.bf16.mxu0 %v3880_v13  ;;  %v4074_v13 = vld [vmem:[#allocation5 + $0x230] sm:$0xff]  }
  0x5c   :  { %3333 = vmatpush3.bf16.msra.mxu1 %v3531_v47 }
  0x5d   :  { %3334 = vmatprep.subr.bf16.mxu1 %v3803_v37 }
  0x5e   :  { %3067 = vmatpush3.bf16.msra.mxu0 %v3886_v15  ;;  %v4082_v15 = vld [vmem:[#allocation5 + $0x1a8] sm:$0xff]  }
  0x5f   :  { %3068 = vmatprep.subr.bf16.mxu0 %v3892_v17  ;;  %v4086_v17 = vld [vmem:[#allocation5 + $0x228] sm:$0xff]  }
  0x60   :  { %3335 = vmatpush3.bf16.msra.mxu1 %v3532_v50 }
  0x61   :  { %3336 = vmatprep.subr.bf16.mxu1 %v3803_v37 }
  0x62   :  { %3069 = vmatpush3.bf16.msra.mxu0 %v3898_v19  ;;  %v4094_v19 = vld [vmem:[#allocation5 + $0x1a0] sm:$0xff]  }
  0x63   :  { %3070 = vmatprep.subr.bf16.mxu0 %v3904_v21  ;;  %v4098_v21 = vld [vmem:[#allocation5 + $0x220] sm:$0xff]  }
  0x64   :  { %3337 = vmatpush3.bf16.msra.mxu1 %v3533_v52 }
  0x65   :  { %3338 = vmatprep.subr.bf16.mxu1 %v3803_v37 }
  0x66   :  { %3071 = vmatpush3.bf16.msra.mxu0 %v3910_v23  ;;  %v4106_v23 = vld [vmem:[#allocation5 + $0x198] sm:$0xff]  }
  0x67   :  { %3072 = vmatprep.subr.bf16.mxu0 %v3916_v25  ;;  %v4110_v25 = vld [vmem:[#allocation5 + $0x218] sm:$0xff]  }
  0x68   :  { %3339 = vmatpush3.bf16.msra.mxu1 %v3534_v53 }
  0x69   :  { %3340 = vmatprep.subr.bf16.mxu1 %v3803_v37 }
  0x6a   :  { %3073 = vmatpush3.bf16.msra.mxu0 %v3922_v27  ;;  %v4118_v27 = vld [vmem:[#allocation5 + $0x190] sm:$0xff]  }
  0x6b   :  { %3074 = vmatprep.subr.bf16.mxu0 %v3928_v29  ;;  %v4122_v29 = vld [vmem:[#allocation5 + $0x210] sm:$0xff]  }
  0x6c   :  { %3341 = vmatpush3.bf16.msra.mxu1 %v3535_v54 }
  0x6d   :  { %3342 = vmatprep.subr.bf16.mxu1 %v3803_v37 }
  0x6e   :  { %3075 = vmatpush3.bf16.msra.mxu0 %v3934_v31  ;;  %v4129_v31 = vld [vmem:[#allocation5 + $0x188] sm:$0xff]  }
  0x6f   :  { %3091 = vmatprep.subr.bf16.mxu0 %v4058_v7 }
  0x70   :  { %3343 = vmatpush3.bf16.msra.mxu1 %v3536_v55 }
  0x71   :  { %629 = vmatmul.mubr.bf16.vlgmr.msra.gmra.mxu0 %v552_v5  ;;  %3113 = vmatprep.subr.bf16.mxu1 %v4062_v9 }
  0x72   :  { %3092 = vmatpush3.bf16.msra.mxu0 %v4060_v8 }
  0x73   :  { %3345 = vmatmul.mubr.bf16.vlgmr.msra.gmra.mxu1 %v554_v6  ;;  %3093 = vmatprep.subr.bf16.mxu0 %v4070_v11 }
  0x74   :  { %3114 = vmatpush3.bf16.msra.mxu1 %v4065_v10 }
  0x75   :  { %3115 = vmatprep.subr.bf16.mxu1 %v4074_v13 }
  0x76   :  { %3094 = vmatpush3.bf16.msra.mxu0 %v4072_v12 }
  0x77   :  { %3095 = vmatprep.subr.bf16.mxu0 %v4082_v15 }
  0x78   :  { %3116 = vmatpush3.bf16.msra.mxu1 %v4077_v14 }
  0x79   :  { %3117 = vmatprep.subr.bf16.mxu1 %v4086_v17 }
  0x7a   :  { %3096 = vmatpush3.bf16.msra.mxu0 %v4084_v16 }
  0x7b   :  { %3097 = vmatprep.subr.bf16.mxu0 %v4094_v19 }
  0x7c   :  { %3118 = vmatpush3.bf16.msra.mxu1 %v4089_v18 }
  0x7d   :  { %3119 = vmatprep.subr.bf16.mxu1 %v4098_v21 }
  0x7e   :  { %3098 = vmatpush3.bf16.msra.mxu0 %v4096_v20 }
  0x7f   :  { %3099 = vmatprep.subr.bf16.mxu0 %v4106_v23 }
  0x80   :  { %3120 = vmatpush3.bf16.msra.mxu1 %v4101_v22 }
  0x81   :  { %3121 = vmatprep.subr.bf16.mxu1 %v4110_v25 }
  0x82   :  { %3100 = vmatpush3.bf16.msra.mxu0 %v4108_v24 }
  0x83   :  { %3101 = vmatprep.subr.bf16.mxu0 %v4118_v27 }
  0x84   :  { %3122 = vmatpush3.bf16.msra.mxu1 %v4113_v26 }
  0x85   :  { %3123 = vmatprep.subr.bf16.mxu1 %v4122_v29 }
  0x86   :  { %3102 = vmatpush3.bf16.msra.mxu0 %v4120_v28 }
  0x87   :  { %3103 = vmatprep.subr.bf16.mxu0 %v4129_v31 }
  0x88   :  { %3124 = vmatpush3.bf16.msra.mxu1 %v4125_v30 }
  0x89   :  { %3125 = vmatprep.subr.bf16.mxu1 %v4133_v33 }
  0x8a   :  { %3104 = vmatpush3.bf16.msra.mxu0 %v4131_v32 }
  0x8b   :  { %3105 = vmatprep.subr.bf16.mxu0 %v4142_v35 }
  0x8c   :  { %3126 = vmatpush3.bf16.msra.mxu1 %v4136_v34 }
  0x8d   :  { %3127 = vmatprep.subr.bf16.mxu1 %v4146_v38 }
  0x8e   :  { %3106 = vmatpush3.bf16.msra.mxu0 %v4144_v36 }
  0x8f   :  { %3348 = vmatprep.subr.bf16.mxu0 %v3803_v37 }
  0x90   :  { %3128 = vmatpush3.bf16.msra.mxu1 %v4149_v39 }
  0x91   :  { %3144 = vmatprep.subr.bf16.mxu1 %v4058_v7 }
  0xf1   :  { %v3001_v40 = vpop.f32.mrf.mxu0 }
  0xf2   :  { %v3023_v41 = vpop.f32.mrf.mxu1 }
  0xf3   :  { %v3002_v42 = vpop.f32.mrf.mxu0 }
  0xf4   :  { %v3024_v43 = vpop.f32.mrf.mxu1  ;;  %v3003_v45 = vadd.f32 %v3002_v42, %v3001_v40 }
  0xf5   :  { %v3004_v44 = vpop.f32.mrf.mxu0  ;;  %v3025_v50 = vadd.f32 %v3024_v43, %v3023_v41 }
  0xf6   :  { %v3026_v47 = vpop.f32.mrf.mxu1  ;;  %v420_v49 = vadd.f32 %v3003_v45, %v4159_v46 }
  0xf7   :  { %v3005_v48 = vpop.f32.mrf.mxu0 }
  0xf8   :  { %v3006_v51 = vadd.f32 %v3005_v48, %v3004_v44  ;;  %v3027_v52 = vpop.f32.mrf.mxu1  ;;  %v461_v55 = vadd.f32 %v3025_v50, %v420_v49 }
  0xf9   :  { %v3028_v54 = vadd.f32 %v3027_v52, %v3026_v47 }
  0xfa   :  { %v423_v53 = vadd.f32 %v3006_v51, %v4159_v46 }
  0xfc   :  { %v464_v60 = vadd.f32 %v3028_v54, %v423_v53 }
 0x111   :  { %v501_v56 = vpop.f32.mrf.mxu0 }
 0x112   :  { %v502_v57 = vadd.f32 %v501_v56, %v461_v55  ;;  %v4163_v56 = vld [vmem:[#allocation5 + $0x278] sm:$0xff]  }
 0x113   :  { %v3326_v58 = vpop.f32.mrf.mxu0  ;;  %v3054_v7 = vpop.f32.mrf.mxu1 }
 0x114   :  { %v516_v59 = vmul.f32 1.442695, %v502_v57  ;;  %v510_v1 = vmul.f32 0.5, %v502_v57  ;;  %vm508_vm1 = vcmp.gt.f32.partialorder %v502_v57, -0.001  ;;  %vm524_vm2 = vcmp.gt.f32.partialorder %v502_v57, 0.0 }
 0x115   :  { %v504_v61 = vpop.f32.mrf.mxu0  ;;  %v3055_v44 = vpop.f32.mrf.mxu1 }
 0x116   :  { %3714 = vpow2.f32 %v516_v59  ;;  %v505_v62 = vadd.f32 %v504_v61, %v464_v60  ;;  %v512_v2 = vadd.f32 1.0, %v510_v1  ;;  %v3056_v51 = vadd.f32 %v3055_v44, %v3054_v7 }
 0x117   :  { %v3327_v63 = vpop.f32.mrf.mxu0  ;;  %v3057_v50 = vpop.f32.mrf.mxu1 }
 0x118   :  { %v518_v0 = vmul.f32 1.442695, %v505_v62  ;;  %v511_v3 = vmul.f32 0.5, %v505_v62  ;;  %v514_v5 = vmul.f32 %v512_v2, %v502_v57  ;;  %vm509_vm3 = vcmp.gt.f32.partialorder %v505_v62, -0.001 }
 0x119   :  { %vm525_vm4 = vcmp.gt.f32.partialorder %v505_v62, 0.0  ;;  %v3058_v52 = vpop.f32.mrf.mxu1 }
 0x11a   :  { %3716 = vpow2.f32 %v518_v0  ;;  %v513_v40 = vadd.f32 1.0, %v511_v3  ;;  %v3059_v61 = vadd.f32 %v3058_v52, %v3057_v50 }
 0x11c   :  { %v515_v45 = vmul.f32 %v513_v40, %v505_v62 }
 0x123   :  { %v3715_v4 = vpop.eup %3714 }
 0x124   :  { %v2805_v6 = vadd.f32 -1.0, %v3715_v4 }
 0x126   :  { %v522_v41 = vsel %vm508_vm1, %v514_v5, %v2805_v6 }
 0x127   :  { %v526_v42 = vsel %vm524_vm2, %v502_v57, %v522_v41  ;;  %v3717_v43 = vpop.eup %3716  ;;  %v590_v57 = vadd.f32 %v3056_v51, %v4159_v46 }
 0x128   :  { %528 = vst [vmem:[#allocation2] sm:$0xff] %v526_v42  ;;  %v2806_v47 = vadd.f32 -1.0, %v3717_v43  ;;  %v593_v43 = vadd.f32 %v3059_v61, %v4159_v46  ;;  %v4176_v46 = vld [vmem:[#allocation5 + $0x268] sm:$0xff]  }
 0x12a   :  { %v523_v48 = vsel %vm509_vm3, %v515_v45, %v2806_v47  ;;  %v4168_v45 = vld [vmem:[#allocation5 + $0x270] sm:$0xff]  }
 0x12b   :  { %v527_v49 = vsel %vm525_vm4, %v505_v62, %v523_v48 }
 0x12c   :  { %529 = vst [vmem:[#allocation2 + $0x8] sm:$0x3f] %v527_v49 }
 0x131   :  { %v3076_v53 = vpop.f32.mrf.mxu0 }
 0x133   :  { %v671_v54 = vpop.f32.mrf.mxu1  ;;  %v3077_v55 = vpop.f32.mrf.mxu0  ;;  %v783_v59 = vld [vmem:[#allocation2 + $0x1] ss:$2 sm:$0x1f]  ;;  %v781_v62 = vld [vmem:[#allocation2] ss:$2 sm:$0x1f] }
 0x134   :  { %v3078_v58 = vadd.f32 %v3077_v55, %v3076_v53  ;;  %v787_v60 = vld [vmem:[#allocation2 + $0x3] ss:$2 sm:$0x1f]  ;;  %v791_v1 = vpack.c.bf16 %v783_v59, %v783_v59  ;;  %v785_v3 = vld [vmem:[#allocation2 + $0x2] ss:$2 sm:$0x1f]  ;;  %v790_v5 = vpack.c.bf16 %v781_v62, %v781_v62 }
 0x135   :  { %v3346_v63 = vpop.f32.mrf.mxu1  ;;  %v3079_v0 = vpop.f32.mrf.mxu0  ;;  %v793_v2 = vpack.c.bf16 %v787_v60, %v787_v60  ;;  %v792_v6 = vpack.c.bf16 %v785_v3, %v785_v3  ;;  %v3576_v59 = vld [vmem:[#allocation5 + $0x240] sm:$0xff]   ;;  %v4293_v62 = vld [vmem:[#allocation5 + $0x2d0] sm:$0xff]  }
 0x136   :  { %v631_v4 = vadd.f32 %v3078_v58, %v590_v57  ;;  %1071 = vmatprep.mubr.bf16.mxu0 %v791_v1  ;;  %v4295_v3 = vld [vmem:[#allocation5 + $0x310] sm:$0xff]  }
 0x137   :  { %v674_v7 = vpop.f32.mrf.mxu1  ;;  %1111 = vmatprep.mubr.bf16.mxu1 %v793_v2  ;;  %v3080_v40 = vpop.f32.mrf.mxu0  ;;  %1072 = vmatmul.mubr.bf16.vlgmr.msra.gmra.mxu0 %v790_v5  ;;  %v4287_v2 = vld [vmem:[#allocation5 + $0x298] sm:$0xff]   ;;  %v4301_v5 = vld [vmem:[#allocation5 + $0x2c8] sm:$0xff]  }
 0x138   :  { %v672_v41 = vadd.f32 %v671_v54, %v631_v4  ;;  %v3081_v42 = vadd.f32 %v3080_v40, %v3079_v0  ;;  %1112 = vmatmul.mubr.bf16.vlgmr.msra.gmra.mxu1 %v792_v6  ;;  %3349 = vmatpush3.bf16.msra.mxu0 %v4163_v56  ;;  %v4297_v4 = vld [vmem:[#allocation5 + $0x290] sm:$0xff]   ;;  %v4303_v6 = vld [vmem:[#allocation5 + $0x308] sm:$0xff]   ;;  %v4310_v40 = vld [vmem:[#allocation5 + $0x2c0] sm:$0xff]  }
 0x139   :  { %v3347_v44 = vpop.f32.mrf.mxu1  ;;  %3145 = vmatpush3.bf16.msra.mxu1 %v4060_v8  ;;  %3350 = vmatprep.subr.bf16.mxu0 %v3803_v37 }
 0x13a   :  { %v686_v47 = vmul.f32 1.442695, %v672_v41  ;;  %3146 = vmatprep.subr.bf16.mxu1 %v4070_v11  ;;  %v634_v48 = vadd.f32 %v3081_v42, %v593_v43  ;;  %3364 = vmatprep.mubr.msk.bf16.mxu0 %vm3804_vm0, %v3803_v37  ;;  %v4182_v11 = vld [vmem:[#allocation5 + $0x260] sm:$0xff]   ;;  %v680_v50 = vmul.f32 0.5, %v672_v41  ;;  %vm678_vm5 = vcmp.gt.f32.partialorder %v672_v41, -0.001 }
 0x13b   :  { %vm694_vm6 = vcmp.gt.f32.partialorder %v672_v41, 0.0  ;;  %v4317_v42 = vld [vmem:[#allocation5 + $0x280] sm:$0xff]  }
 0x13c   :  { %3718 = vpow2.f32 %v686_v47  ;;  %v675_v49 = vadd.f32 %v674_v7, %v634_v48  ;;  %3351 = vmatpush3.bf16.msra.mxu0 %v4168_v45  ;;  %v4307_v7 = vld [vmem:[#allocation5 + $0x288] sm:$0xff]  }
 0x13d   :  { %3147 = vmatpush3.bf16.msra.mxu1 %v4072_v12  ;;  %3352 = vmatprep.subr.bf16.mxu0 %v3803_v37  ;;  %v4188_v12 = vld [vmem:[#allocation5 + $0x258] sm:$0xff]  }
 0x13e   :  { %3148 = vmatprep.subr.bf16.mxu1 %v4082_v15  ;;  %v688_v8 = vmul.f32 1.442695, %v675_v49  ;;  %v682_v15 = vadd.f32 1.0, %v680_v50  ;;  %v681_v51 = vmul.f32 0.5, %v675_v49  ;;  %vm679_vm7 = vcmp.gt.f32.partialorder %v675_v49, -0.001 }
 0x13f   :  { %vm695_vm8 = vcmp.gt.f32.partialorder %v675_v49, 0.0  ;;  %v2819_v50 = vld [vmem:[%s4560_s2 + $0x1] ss:$0 sm:$0xff] }
 0x140   :  { %3720 = vpow2.f32 %v688_v8  ;;  %3353 = vmatpush3.bf16.msra.mxu0 %v4176_v46 }
 0x141   :  { %3149 = vmatpush3.bf16.msra.mxu1 %v4084_v16  ;;  %3354 = vmatprep.subr.bf16.mxu0 %v3803_v37  ;;  %v4194_v16 = vld [vmem:[#allocation5 + $0x250] sm:$0xff]  }
 0x142   :  { %3150 = vmatprep.subr.bf16.mxu1 %v4094_v19  ;;  %v684_v19 = vmul.f32 %v682_v15, %v672_v41 }
 0x144   :  { %3355 = vmatpush3.bf16.msra.mxu0 %v4182_v11 }
 0x145   :  { %3151 = vmatpush3.bf16.msra.mxu1 %v4096_v20  ;;  %3356 = vmatprep.subr.bf16.mxu0 %v3803_v37  ;;  %v683_v20 = vadd.f32 1.0, %v681_v51 }
 0x146   :  { %3152 = vmatprep.subr.bf16.mxu1 %v4106_v23  ;;  %v4200_v23 = vld [vmem:[#allocation5 + $0x248] sm:$0xff]  }
 0x148   :  { %3357 = vmatpush3.bf16.msra.mxu0 %v4188_v12 }
 0x149   :  { %v3719_v52 = vpop.eup %3718  ;;  %3153 = vmatpush3.bf16.msra.mxu1 %v4108_v24  ;;  %3358 = vmatprep.subr.bf16.mxu0 %v3803_v37  ;;  %v685_v24 = vmul.f32 %v683_v20, %v675_v49 }
 0x14a   :  { %v2817_v53 = vadd.f32 -1.0, %v3719_v52  ;;  %3154 = vmatprep.subr.bf16.mxu1 %v4118_v27 }
 0x14c   :  { %v692_v54 = vsel %vm678_vm5, %v684_v19, %v2817_v53  ;;  %3359 = vmatpush3.bf16.msra.mxu0 %v4194_v16 }
 0x14d   :  { %v696_v55 = vsel %vm694_vm6, %v672_v41, %v692_v54  ;;  %3155 = vmatpush3.bf16.msra.mxu1 %v4120_v28  ;;  %v3721_v57 = vpop.eup %3720  ;;  %3360 = vmatprep.subr.bf16.mxu0 %v3803_v37  ;;  %v789_v28 = vld [vmem:[#allocation2 + $0x4] ss:$2 sm:$0x1f]  ;;  %v4313_v41 = vld [vmem:[#allocation5 + $0x300] sm:$0xff]  }
 0x14e   :  { %698 = vst [vmem:[#allocation2 + $0xe] sm:$0xff] %v696_v55  ;;  %3156 = vmatprep.subr.bf16.mxu1 %v4129_v31  ;;  %v2818_v58 = vadd.f32 -1.0, %v3721_v57  ;;  %v794_v31 = vpack.c.bf16 %v789_v28, %v789_v28 }
 0x150   :  { %v693_v27 = vsel %vm679_vm7, %v685_v24, %v2818_v58  ;;  %3361 = vmatpush3.bf16.msra.mxu0 %v4200_v23 }
 0x151   :  { %3157 = vmatpush3.bf16.msra.mxu1 %v4131_v32  ;;  %v697_v60 = vsel %vm695_vm8, %v675_v49, %v693_v27  ;;  %3362 = vmatprep.subr.bf16.mxu0 %v3803_v37 }
 0x152   :  { %3158 = vmatprep.subr.bf16.mxu1 %v4142_v35  ;;  %699 = vst [vmem:[#allocation2 + $0x16] sm:$0x3f] %v697_v60 }
 0x154   :  { %3363 = vmatpush3.bf16.msra.mxu0 %v3576_v59 }
 0x155   :  { %3159 = vmatpush3.bf16.msra.mxu1 %v4144_v36  ;;  %3166 = vmatprep.subr.bf16.mxu0 %v4062_v9  ;;  %v4275_v36 = vld [vmem:[#allocation5 + $0x320] sm:$0xff]  }
 0x156   :  { %3368 = vmatprep.subr.bf16.mxu1 %v3803_v37 }
 0x157   :  { %3365 = vmatmul.mubr.bf16.vlgmr.msra.gmra.mxu0 %v794_v31 }
 0x158   :  { %3167 = vmatpush3.bf16.msra.mxu0 %v4065_v10 }
 0x159   :  { %3168 = vmatprep.subr.bf16.mxu0 %v4074_v13  ;;  %v1173_v32 = vld [vmem:[#allocation2 + $0xf] ss:$2 sm:$0x1f]  ;;  %v1171_v35 = vld [vmem:[#allocation2 + $0xe] ss:$2 sm:$0x1f] }
 0x15a   :  { %v1177_v61 = vld [vmem:[#allocation2 + $0x11] ss:$2 sm:$0x1f]  ;;  %v1181_v63 = vpack.c.bf16 %v1173_v32, %v1173_v32  ;;  %v1180_v1 = vpack.c.bf16 %v1171_v35, %v1171_v35  ;;  %v1175_v9 = vld [vmem:[#allocation2 + $0x10] ss:$2 sm:$0x1f] }
 0x15b   :  { %v1183_v0 = vpack.c.bf16 %v1177_v61, %v1177_v61  ;;  %v1182_v10 = vpack.c.bf16 %v1175_v9, %v1175_v9  ;;  %v1179_v13 = vld [vmem:[#allocation2 + $0x12] ss:$2 sm:$0x1f] }
 0x15c   :  { %3169 = vmatpush3.bf16.msra.mxu0 %v4077_v14  ;;  %1217 = vmatprep.mubr.bf16.mxu1 %v1181_v63  ;;  %v1184_v14 = vpack.c.bf16 %v1179_v13, %v1179_v13 }
 0x15d   :  { %1257 = vmatprep.mubr.bf16.mxu0 %v1183_v0  ;;  %1218 = vmatmul.mubr.bf16.vlgmr.msra.gmra.mxu1 %v1180_v1 }
 0x15e   :  { %3369 = vmatpush3.bf16.msra.mxu1 %v4163_v56  ;;  %3170 = vmatprep.subr.bf16.mxu0 %v4086_v17  ;;  %v3577_v17 = vld [vmem:[#allocation5 + $0x2f8] sm:$0xff]  }
 0x15f   :  { %3370 = vmatprep.subr.bf16.mxu1 %v3803_v37  ;;  %3384 = vmatprep.mubr.msk.bf16.mxu1 %vm3804_vm0, %v3803_v37  ;;  %v4285_v56 = vld [vmem:[#allocation5 + $0x318] sm:$0xff]  }
 0x160   :  { %3171 = vmatpush3.bf16.msra.mxu0 %v4089_v18  ;;  %v4246_v18 = vld [vmem:[#allocation5 + $0x338] sm:$0xff]  }
 0x161   :  { %3172 = vmatprep.subr.bf16.mxu0 %v4098_v21  ;;  %v4248_v21 = vld [vmem:[#allocation5 + $0x2b8] sm:$0xff]  }
 0x162   :  { %3371 = vmatpush3.bf16.msra.mxu1 %v4168_v45 }
 0x163   :  { %3372 = vmatprep.subr.bf16.mxu1 %v3803_v37 }
 0x164   :  { %3173 = vmatpush3.bf16.msra.mxu0 %v4101_v22  ;;  %v4253_v22 = vld [vmem:[#allocation5 + $0x2f0] sm:$0xff]  }
 0x165   :  { %3174 = vmatprep.subr.bf16.mxu0 %v4110_v25  ;;  %v4255_v25 = vld [vmem:[#allocation5 + $0x330] sm:$0xff]  }
 0x166   :  { %3373 = vmatpush3.bf16.msra.mxu1 %v4176_v46 }
 0x167   :  { %3374 = vmatprep.subr.bf16.mxu1 %v3803_v37 }
 0x168   :  { %3175 = vmatpush3.bf16.msra.mxu0 %v4113_v26  ;;  %v4257_v26 = vld [vmem:[#allocation5 + $0x2b0] sm:$0xff]  }
 0x169   :  { %3176 = vmatprep.subr.bf16.mxu0 %v4122_v29  ;;  %v4263_v29 = vld [vmem:[#allocation5 + $0x2e8] sm:$0xff]  }
 0x16a   :  { %3375 = vmatpush3.bf16.msra.mxu1 %v4182_v11 }
 0x16b   :  { %3376 = vmatprep.subr.bf16.mxu1 %v3803_v37 }
 0x16c   :  { %3177 = vmatpush3.bf16.msra.mxu0 %v4125_v30  ;;  %v4265_v30 = vld [vmem:[#allocation5 + $0x328] sm:$0xff]  }
 0x16d   :  { %3178 = vmatprep.subr.bf16.mxu0 %v4133_v33  ;;  %v4267_v33 = vld [vmem:[#allocation5 + $0x2a8] sm:$0xff]  }
 0x16e   :  { %3377 = vmatpush3.bf16.msra.mxu1 %v4188_v12 }
 0x16f   :  { %3378 = vmatprep.subr.bf16.mxu1 %v3803_v37 }
 0x170   :  { %3179 = vmatpush3.bf16.msra.mxu0 %v4136_v34  ;;  %v4273_v34 = vld [vmem:[#allocation5 + $0x2e0] sm:$0xff]  }
 0x171   :  { %3180 = vmatprep.subr.bf16.mxu0 %v4146_v38  ;;  %v4277_v38 = vld [vmem:[#allocation5 + $0x2a0] sm:$0xff]  }
 0x172   :  { %3379 = vmatpush3.bf16.msra.mxu1 %v4194_v16 }
 0x173   :  { %3380 = vmatprep.subr.bf16.mxu1 %v3803_v37 }
 0x174   :  { %3181 = vmatpush3.bf16.msra.mxu0 %v4149_v39  ;;  %v4283_v39 = vld [vmem:[#allocation5 + $0x2d8] sm:$0xff]  }
 0x175   :  { %3197 = vmatprep.subr.bf16.mxu0 %v3577_v17 }
 0x176   :  { %3381 = vmatpush3.bf16.msra.mxu1 %v4200_v23 }
 0x177   :  { %1258 = vmatmul.mubr.bf16.vlgmr.msra.gmra.mxu0 %v1182_v10  ;;  %3382 = vmatprep.subr.bf16.mxu1 %v3803_v37 }
 0x178   :  { %3198 = vmatpush3.bf16.msra.mxu0 %v4248_v21 }
 0x179   :  { %3199 = vmatprep.subr.bf16.mxu0 %v4253_v22 }
 0x17a   :  { %3383 = vmatpush3.bf16.msra.mxu1 %v3576_v59 }
 0x17b   :  { %3388 = vmatprep.subr.bf16.mxu1 %v3803_v37 }
 0x17c   :  { %3200 = vmatpush3.bf16.msra.mxu0 %v4257_v26 }
 0x17d   :  { %3385 = vmatmul.mubr.bf16.vlgmr.msra.gmra.mxu1 %v1184_v14  ;;  %3201 = vmatprep.subr.bf16.mxu0 %v4263_v29 }
 0x17e   :  { %3404 = vmatprep.mubr.msk.bf16.mxu1 %vm3804_vm0, %v3803_v37  ;;  %3389 = vmatpush3.bf16.msra.mxu1 %v4246_v18 }
 0x17f   :  { %3390 = vmatprep.subr.bf16.mxu1 %v3803_v37 }
 0x180   :  { %3202 = vmatpush3.bf16.msra.mxu0 %v4267_v33 }
 0x181   :  { %3203 = vmatprep.subr.bf16.mxu0 %v4273_v34 }
 0x182   :  { %3391 = vmatpush3.bf16.msra.mxu1 %v4255_v25 }
 0x183   :  { %3392 = vmatprep.subr.bf16.mxu1 %v3803_v37 }
 0x184   :  { %3204 = vmatpush3.bf16.msra.mxu0 %v4277_v38 }
 0x185   :  { %3205 = vmatprep.subr.bf16.mxu0 %v4283_v39 }
 0x186   :  { %3393 = vmatpush3.bf16.msra.mxu1 %v4265_v30 }
 0x187   :  { %3394 = vmatprep.subr.bf16.mxu1 %v3803_v37 }
 0x188   :  { %3206 = vmatpush3.bf16.msra.mxu0 %v4287_v2 }
 0x189   :  { %3207 = vmatprep.subr.bf16.mxu0 %v4293_v62 }
 0x18a   :  { %3395 = vmatpush3.bf16.msra.mxu1 %v4275_v36 }
 0x18b   :  { %3396 = vmatprep.subr.bf16.mxu1 %v3803_v37 }
 0x18c   :  { %3208 = vmatpush3.bf16.msra.mxu0 %v4297_v4 }
 0x18d   :  { %3209 = vmatprep.subr.bf16.mxu0 %v4301_v5 }
 0x18e   :  { %3397 = vmatpush3.bf16.msra.mxu1 %v4285_v56 }
 0x18f   :  { %3398 = vmatprep.subr.bf16.mxu1 %v3803_v37 }
 0x190   :  { %3210 = vmatpush3.bf16.msra.mxu0 %v4307_v7 }
 0x191   :  { %3211 = vmatprep.subr.bf16.mxu0 %v4310_v40 }
 0x192   :  { %3399 = vmatpush3.bf16.msra.mxu1 %v4295_v3 }
 0x193   :  { %3400 = vmatprep.subr.bf16.mxu1 %v3803_v37 }
 0x194   :  { %3212 = vmatpush3.bf16.msra.mxu0 %v4317_v42 }
 0x195   :  { %3228 = vmatprep.subr.bf16.mxu0 %v3577_v17 }
 0x196   :  { %3401 = vmatpush3.bf16.msra.mxu1 %v4303_v6 }
 0x197   :  { %3402 = vmatprep.subr.bf16.mxu1 %v3803_v37 }
 0x19a   :  { %3403 = vmatpush3.bf16.msra.mxu1 %v4313_v41 }
 0x19b   :  { %3408 = vmatprep.subr.bf16.mxu1 %v3803_v37 }
 0x1f7   :  { %v3107_v43 = vpop.f32.mrf.mxu0 }
 0x1f8   :  { %v3129_v44 = vpop.f32.mrf.mxu1 }
 0x1f9   :  { %v3108_v45 = vpop.f32.mrf.mxu0 }
 0x1fa   :  { %v3130_v47 = vpop.f32.mrf.mxu1  ;;  %v3109_v11 = vadd.f32 %v3108_v45, %v3107_v43 }
 0x1fb   :  { %v3110_v48 = vpop.f32.mrf.mxu0  ;;  %v3131_v15 = vadd.f32 %v3130_v47, %v3129_v44 }
 0x1fc   :  { %v3132_v49 = vpop.f32.mrf.mxu1  ;;  %v1074_v12 = vadd.f32 %v3109_v11, %v2819_v50  ;;  %v3609_v11 = vld [vmem:[#allocation5 + $0x368] sm:$0xff]  }
 0x1fd   :  { %v3111_v46 = vpop.f32.mrf.mxu0 }
 0x1fe   :  { %v3133_v8 = vpop.f32.mrf.mxu1  ;;  %v1114_v51 = vadd.f32 %v3131_v15, %v1074_v12  ;;  %v3611_v12 = vld [vmem:[#allocation5 + $0x3e0] sm:$0xff]  }
 0x1ff   :  { %v3608_v8 = vld [vmem:[#allocation5 + $0x3e8] sm:$0xff]   ;;  %v3612_v15 = vld [vmem:[#allocation5 + $0x360] sm:$0xff]  }
 0x217   :  { %v1153_v52 = vpop.f32.mrf.mxu0 }
 0x218   :  { %v1154_v16 = vadd.f32 %v1153_v52, %v1114_v51  ;;  %v3613_v51 = vld [vmem:[#allocation5 + $0x398] sm:$0xff]  }
 0x219   :  { %v3366_v19 = vpop.f32.mrf.mxu0  ;;  %v3614_v52 = vld [vmem:[#allocation5 + $0x3d8] sm:$0xff]  }
 0x21a   :  { %v1163_v53 = vmul.f32 1.442695, %v1154_v16  ;;  %v1160_v24 = vmul.f32 0.5, %v1154_v16  ;;  %vm1159_vm9 = vcmp.gt.f32.partialorder %v1154_v16, -0.001  ;;  %vm1167_vm10 = vcmp.gt.f32.partialorder %v1154_v16, 0.0 }
 0x21b   :  { %v1156_v20 = vpop.f32.mrf.mxu0  ;;  %v3616_v19 = vld [vmem:[#allocation5 + $0x390] sm:$0xff]  }
 0x21c   :  { %3722 = vpow2.f32 %v1163_v53  ;;  %v1161_v27 = vadd.f32 1.0, %v1160_v24  ;;  %v3617_v53 = vld [vmem:[#allocation5 + $0x3d0] sm:$0xff]   ;;  %v3623_v24 = vld [vmem:[#allocation5 + $0x3c0] sm:$0xff]  }
 0x21d   :  { %v3367_v54 = vpop.f32.mrf.mxu0  ;;  %v3160_v55 = vpop.f32.mrf.mxu1  ;;  %v3618_v20 = vld [vmem:[#allocation5 + $0x350] sm:$0xff]  }
 0x21e   :  { %v1162_v60 = vmul.f32 %v1161_v27, %v1154_v16  ;;  %v3619_v54 = vld [vmem:[#allocation5 + $0x388] sm:$0xff]  }
 0x21f   :  { %v3161_v23 = vpop.f32.mrf.mxu1 }
 0x220   :  { %v3162_v35 = vadd.f32 %v3161_v23, %v3160_v55  ;;  %v3620_v55 = vld [vmem:[#allocation5 + $0x3c8] sm:$0xff]  }
 0x221   :  { %v3163_v57 = vpop.f32.mrf.mxu1  ;;  %v3621_v23 = vld [vmem:[#allocation5 + $0x348] sm:$0xff]  }
 0x222   :  { %v1220_v17 = vadd.f32 %v3162_v35, %v2819_v50  ;;  %v3610_v50 = vld [vmem:[#allocation5 + $0x3a0] sm:$0xff]  }
 0x223   :  { %v3164_v58 = vpop.f32.mrf.mxu1  ;;  %v3622_v57 = vld [vmem:[#allocation5 + $0x380] sm:$0xff]  }
 0x224   :  { %v3624_v58 = vld [vmem:[#allocation5 + $0x340] sm:$0xff]  }
 0x229   :  { %v3723_v59 = vpop.eup %3722 }
 0x22a   :  { %v2860_v28 = vadd.f32 -1.0, %v3723_v59 }
 0x22c   :  { %v1166_v31 = vsel %vm1159_vm9, %v1162_v60, %v2860_v28  ;;  %v2862_v28 = vld [vmem:[%s4560_s2 + $0x2] ss:$0 sm:$0xff] }
 0x22d   :  { %v1168_v32 = vsel %vm1167_vm10, %v1154_v16, %v1166_v31  ;;  %v3615_v16 = vld [vmem:[#allocation5 + $0x358] sm:$0xff]  }
 0x22e   :  { %1169 = vst [vmem:[#allocation3] sm:$0x1f] %v1168_v32 }
 0x235   :  { %v1366_v61 = vld [vmem:[#allocation3 + $0x1] sm:$0x7] }
 0x236   :  { %v1367_v63 = vld [vmem:[#allocation3 + $0x2] sm:$0x7]  ;;  %v1369_v1 = vpack.c.bf16 %v1366_v61, %v1366_v61 }
 0x237   :  { %v1365_v0 = vld [vmem:[#allocation3] sm:$0x7]  ;;  %v1370_v9 = vpack.c.bf16 %v1367_v63, %v1367_v63  ;;  %v3182_v13 = vpop.f32.mrf.mxu0 }
 0x238   :  { %v1368_v10 = vpack.c.bf16 %v1365_v0, %v1365_v0  ;;  %1551 = vmatprep.mubr.bf16.mxu0 %v1369_v1 }
 0x239   :  { %3405 = vmatmul.mubr.bf16.vlgmr.msra.gmra.mxu1 %v1370_v9  ;;  %v3183_v14 = vpop.f32.mrf.mxu0 }
 0x23a   :  { %1552 = vmatmul.mubr.bf16.vlgmr.msra.gmra.mxu0 %v1368_v10  ;;  %3409 = vmatpush3.bf16.msra.mxu1 %v4246_v18  ;;  %v3184_v43 = vadd.f32 %v3183_v14, %v3182_v13  ;;  %v3805_v14 = vmov 1983009808  }
 0x23b   :  { %3229 = vmatpush3.bf16.msra.mxu0 %v4248_v21  ;;  %3410 = vmatprep.subr.bf16.mxu1 %v3803_v37  ;;  %v3185_v44 = vpop.f32.mrf.mxu0 }
 0x23c   :  { %3230 = vmatprep.subr.bf16.mxu0 %v4253_v22  ;;  %3424 = vmatprep.mubr.msk.bf16.mxu1 %vm3804_vm0, %v3803_v37  ;;  %v1260_v45 = vadd.f32 %v3184_v43, %v1220_v17  ;;  %v1612_v17 = vunpack.c.l.s4 %v3805_v14  ;;  %v1614_v43 = vlaneseq }
 0x23d   :  { %v3186_v47 = vpop.f32.mrf.mxu0  ;;  %v1299_v48 = vpop.f32.mrf.mxu1 }
 0x23e   :  { %3411 = vmatpush3.bf16.msra.mxu1 %v4255_v25  ;;  %v1300_v49 = vadd.f32 %v1299_v48, %v1260_v45  ;;  %v1613_v45 = vunpack.c.0.s8 %v1612_v17  ;;  %v1615_v47 = vshrl.u32 %v1614_v43, 7 }
 0x23f   :  { %3231 = vmatpush3.bf16.msra.mxu0 %v4257_v26  ;;  %3412 = vmatprep.subr.bf16.mxu1 %v3803_v37  ;;  %v3386_v18 = vpop.f32.mrf.mxu1 }
 0x240   :  { %3232 = vmatprep.subr.bf16.mxu0 %v4263_v29  ;;  %v1309_v21 = vmul.f32 1.442695, %v1300_v49  ;;  %v1306_v25 = vmul.f32 0.5, %v1300_v49  ;;  %vm1305_vm11 = vcmp.gt.f32.partialorder %v1300_v49, -0.001  ;;  %vm1313_vm12 = vcmp.gt.f32.partialorder %v1300_v49, 0.0 }
 0x241   :  { %v1302_v46 = vpop.f32.mrf.mxu1 }
 0x242   :  { %3413 = vmatpush3.bf16.msra.mxu1 %v4265_v30  ;;  %3724 = vpow2.f32 %v1309_v21  ;;  %v1307_v26 = vadd.f32 1.0, %v1306_v25  ;;  %v4373_v21 = vsub.s32 %v1613_v45, %v1615_v47 }
 0x243   :  { %3233 = vmatpush3.bf16.msra.mxu0 %v4267_v33  ;;  %3414 = vmatprep.subr.bf16.mxu1 %v3803_v37  ;;  %v3387_v22 = vpop.f32.mrf.mxu1 }
 0x244   :  { %3234 = vmatprep.subr.bf16.mxu0 %v4273_v34  ;;  %v1308_v30 = vmul.f32 %v1307_v26, %v1300_v49 }
 0x246   :  { %3415 = vmatpush3.bf16.msra.mxu1 %v4275_v36 }
 0x247   :  { %3235 = vmatpush3.bf16.msra.mxu0 %v4277_v38  ;;  %3416 = vmatprep.subr.bf16.mxu1 %v3803_v37 }
 0x248   :  { %3236 = vmatprep.subr.bf16.mxu0 %v4283_v39 }
 0x24a   :  { %3417 = vmatpush3.bf16.msra.mxu1 %v4285_v56 }
 0x24b   :  { %3237 = vmatpush3.bf16.msra.mxu0 %v4287_v2  ;;  %3418 = vmatprep.subr.bf16.mxu1 %v3803_v37 }
 0x24c   :  { %3238 = vmatprep.subr.bf16.mxu0 %v4293_v62 }
 0x24e   :  { %3419 = vmatpush3.bf16.msra.mxu1 %v4295_v3 }
 0x24f   :  { %3239 = vmatpush3.bf16.msra.mxu0 %v4297_v4  ;;  %3420 = vmatprep.subr.bf16.mxu1 %v3803_v37  ;;  %v3725_v29 = vpop.eup %3724  ;;  %v3601_v4 = vld [vmem:[#allocation5 + $0x3b8] sm:$0xff]  }
 0x250   :  { %3240 = vmatprep.subr.bf16.mxu0 %v4301_v5  ;;  %v2861_v33 = vadd.f32 -1.0, %v3725_v29  ;;  %v3602_v5 = vld [vmem:[#allocation5 + $0x3f8] sm:$0xff]  }
 0x252   :  { %3421 = vmatpush3.bf16.msra.mxu1 %v4303_v6  ;;  %v1312_v34 = vsel %vm1305_vm11, %v1308_v30, %v2861_v33  ;;  %v3603_v6 = vld [vmem:[#allocation5 + $0x378] sm:$0xff]  }
 0x253   :  { %3241 = vmatpush3.bf16.msra.mxu0 %v4307_v7  ;;  %3422 = vmatprep.subr.bf16.mxu1 %v3803_v37  ;;  %v1314_v36 = vsel %vm1313_vm12, %v1300_v49, %v1312_v34  ;;  %v3604_v7 = vld [vmem:[#allocation5 + $0x3b0] sm:$0xff]  }
 0x254   :  { %3242 = vmatprep.subr.bf16.mxu0 %v4310_v40  ;;  %1315 = vst [vmem:[#allocation3 + $0x5] sm:$0x1f] %v1314_v36  ;;  %v3605_v40 = vld [vmem:[#allocation5 + $0x3f0] sm:$0xff]  }
 0x256   :  { %3423 = vmatpush3.bf16.msra.mxu1 %v4313_v41  ;;  %v3606_v41 = vld [vmem:[#allocation5 + $0x370] sm:$0xff]  }
 0x257   :  { %3243 = vmatpush3.bf16.msra.mxu0 %v4317_v42  ;;  %3428 = vmatprep.subr.bf16.mxu1 %v3803_v37  ;;  %v3607_v42 = vld [vmem:[#allocation5 + $0x3a8] sm:$0xff]  }
 0x258   :  { %3259 = vmatprep.subr.bf16.mxu0 %v3601_v4 }
 0x25b   :  { %v1626_v38 = vld [vmem:[#allocation3 + $0x6] sm:$0x7] }
 0x25c   :  { %v1627_v39 = vld [vmem:[#allocation3 + $0x7] sm:$0x7]  ;;  %v1629_v2 = vpack.c.bf16 %v1626_v38, %v1626_v38 }
 0x25d   :  { %v1625_v56 = vld [vmem:[#allocation3 + $0x5] sm:$0x7]  ;;  %v1630_v62 = vpack.c.bf16 %v1627_v39, %v1627_v39 }
 0x25e   :  { %v1628_v3 = vpack.c.bf16 %v1625_v56, %v1625_v56  ;;  %1663 = vmatprep.mubr.bf16.mxu0 %v1629_v2 }
 0x25f   :  { %3425 = vmatmul.mubr.bf16.vlgmr.msra.gmra.mxu1 %v1630_v62 }
 0x260   :  { %1664 = vmatmul.mubr.bf16.vlgmr.msra.gmra.mxu0 %v1628_v3  ;;  %3444 = vmatprep.mubr.msk.bf16.mxu1 %vm3804_vm0, %v3803_v37 }
 0x261   :  { %3429 = vmatpush3.bf16.msra.mxu1 %v3602_v5  ;;  %3260 = vmatpush3.bf16.msra.mxu0 %v3603_v6 }
 0x262   :  { %3430 = vmatprep.subr.bf16.mxu1 %v3803_v37  ;;  %3261 = vmatprep.subr.bf16.mxu0 %v3604_v7 }
 0x265   :  { %3431 = vmatpush3.bf16.msra.mxu1 %v3605_v40  ;;  %3262 = vmatpush3.bf16.msra.mxu0 %v3606_v41 }
 0x266   :  { %3432 = vmatprep.subr.bf16.mxu1 %v3803_v37  ;;  %3263 = vmatprep.subr.bf16.mxu0 %v3607_v42 }
 0x269   :  { %3433 = vmatpush3.bf16.msra.mxu1 %v3608_v8  ;;  %3264 = vmatpush3.bf16.msra.mxu0 %v3609_v11 }
 0x26a   :  { %3434 = vmatprep.subr.bf16.mxu1 %v3803_v37  ;;  %3265 = vmatprep.subr.bf16.mxu0 %v3610_v50 }
 0x26d   :  { %3435 = vmatpush3.bf16.msra.mxu1 %v3611_v12  ;;  %3266 = vmatpush3.bf16.msra.mxu0 %v3612_v15 }
 0x26e   :  { %3436 = vmatprep.subr.bf16.mxu1 %v3803_v37  ;;  %3267 = vmatprep.subr.bf16.mxu0 %v3613_v51 }
 0x271   :  { %3437 = vmatpush3.bf16.msra.mxu1 %v3614_v52  ;;  %3268 = vmatpush3.bf16.msra.mxu0 %v3615_v16 }
 0x272   :  { %3438 = vmatprep.subr.bf16.mxu1 %v3803_v37  ;;  %3269 = vmatprep.subr.bf16.mxu0 %v3616_v19 }
 0x275   :  { %3439 = vmatpush3.bf16.msra.mxu1 %v3617_v53  ;;  %3270 = vmatpush3.bf16.msra.mxu0 %v3618_v20 }
 0x276   :  { %3440 = vmatprep.subr.bf16.mxu1 %v3803_v37  ;;  %3271 = vmatprep.subr.bf16.mxu0 %v3619_v54 }
 0x279   :  { %3441 = vmatpush3.bf16.msra.mxu1 %v3620_v55  ;;  %3272 = vmatpush3.bf16.msra.mxu0 %v3621_v23  ;;  %v3626_v23 = vld [vmem:[#allocation5 + $0x438] sm:$0xff]  }
 0x27a   :  { %3442 = vmatprep.subr.bf16.mxu1 %v3803_v37  ;;  %3273 = vmatprep.subr.bf16.mxu0 %v3622_v57  ;;  %v3627_v57 = vld [vmem:[#allocation5 + $0x430] sm:$0xff]  }
 0x27d   :  { %3443 = vmatpush3.bf16.msra.mxu1 %v3623_v24  ;;  %3274 = vmatpush3.bf16.msra.mxu0 %v3624_v58  ;;  %v3628_v24 = vld [vmem:[#allocation5 + $0x428] sm:$0xff]   ;;  %v3629_v58 = vld [vmem:[#allocation5 + $0x420] sm:$0xff]  }
 0x27e   :  { %3468 = vmatprep.subr.bf16.mxu1 %v3803_v37  ;;  %3448 = vmatprep.subr.bf16.mxu0 %v3803_v37 }
 0x2f9   :  { %v1593_v27 = vpop.f32.mrf.mxu1 }
 0x2fa   :  { %v3213_v59 = vpop.f32.mrf.mxu0 }
 0x2fb   :  { %v3406_v60 = vpop.f32.mrf.mxu1 }
 0x2fc   :  { %v3214_v31 = vpop.f32.mrf.mxu0  ;;  %v3632_v60 = vld [vmem:[#allocation5 + $0x408] sm:$0xff]  }
 0x2fd   :  { %v3215_v32 = vadd.f32 %v3214_v31, %v3213_v59  ;;  %v1596_v61 = vpop.f32.mrf.mxu1  ;;  %v3631_v59 = vld [vmem:[#allocation5 + $0x410] sm:$0xff]   ;;  %v3634_v31 = vld [vmem:[#allocation5 + $0x478] sm:$0xff]  }
 0x2fe   :  { %v3216_v63 = vpop.f32.mrf.mxu0 }
 0x2ff   :  { %v1554_v0 = vadd.f32 %v3215_v32, %v2862_v28  ;;  %v3407_v35 = vpop.f32.mrf.mxu1  ;;  %v3635_v32 = vld [vmem:[#allocation5 + $0x470] sm:$0xff]  }
 0x300   :  { %v3217_v1 = vpop.f32.mrf.mxu0  ;;  %v2891_v35 = vld [vmem:[%s4560_s2 + $0x3] ss:$0 sm:$0xff] }
 0x301   :  { %v1594_v9 = vadd.f32 %v1593_v27, %v1554_v0  ;;  %v3630_v27 = vld [vmem:[#allocation5 + $0x418] sm:$0xff]  }
 0x303   :  { %v1603_v10 = vmul.f32 1.442695, %v1594_v9  ;;  %v1600_v13 = vmul.f32 0.5, %v1594_v9  ;;  %vm1599_vm13 = vcmp.gt.f32.partialorder %v1594_v9, -0.001  ;;  %vm1607_vm14 = vcmp.gt.f32.partialorder %v1594_v9, 0.0 }
 0x305   :  { %3726 = vpow2.f32 %v1603_v10  ;;  %v1601_v44 = vadd.f32 1.0, %v1600_v13 }
 0x307   :  { %v1602_v49 = vmul.f32 %v1601_v44, %v1594_v9 }
 0x312   :  { %v3727_v48 = vpop.eup %3726 }
 0x313   :  { %v2887_v18 = vadd.f32 -1.0, %v3727_v48 }
 0x315   :  { %v1606_v46 = vsel %vm1599_vm13, %v1602_v49, %v2887_v18 }
 0x316   :  { %v1608_v22 = vsel %vm1607_vm14, %v1594_v9, %v1606_v46 }
 0x317   :  { %1609 = vst [vmem:[#allocation4] sm:$0x1] %v1608_v22  ;;  %v1617_v25 = vrot.slane %v1608_v22, %v4373_v21 }
 0x319   :  { %v2888_v26 = vrot.slane %v1617_v25, 9  ;;  %v1622_v29 = vcombine.high %v1617_v25, %v1617_v25 }
 0x31b   :  { %1621 = vst [vmem:[#allocation4 + $0x2] sm:$0x1] %v2888_v26  ;;  %1624 = vst [vmem:[#allocation4 + $0x4] sm:$0x1] %v1622_v29  ;;  %v3636_v29 = vld [vmem:[#allocation5 + $0x468] sm:$0xff]  }
 0x31f   :  { %v1705_v30 = vpop.f32.mrf.mxu1 }
 0x320   :  { %v3244_v33 = vpop.f32.mrf.mxu0 }
 0x321   :  { %v3426_v34 = vpop.f32.mrf.mxu1 }
 0x322   :  { %v3245_v36 = vpop.f32.mrf.mxu0  ;;  %v3639_v34 = vld [vmem:[#allocation5 + $0x450] sm:$0xff]  }
 0x323   :  { %v3246_v38 = vadd.f32 %v3245_v36, %v3244_v33  ;;  %v1708_v39 = vpop.f32.mrf.mxu1  ;;  %v3638_v33 = vld [vmem:[#allocation5 + $0x458] sm:$0xff]   ;;  %v3640_v36 = vld [vmem:[#allocation5 + $0x448] sm:$0xff]  }
 0x324   :  { %v3247_v56 = vpop.f32.mrf.mxu0  ;;  %v3642_v39 = vld [vmem:[%s4561_s3 + $0x150] ss:$24 sps:$4 sm:$0xff]  }
 0x325   :  { %v1666_v2 = vadd.f32 %v3246_v38, %v2862_v28  ;;  %v3427_v62 = vpop.f32.mrf.mxu1  ;;  %v3633_v28 = vld [vmem:[#allocation5 + $0x400] sm:$0xff]  }
 0x326   :  { %v3248_v3 = vpop.f32.mrf.mxu0  ;;  %v3641_v38 = vld [vmem:[#allocation5 + $0x440] sm:$0xff]  }
 0x327   :  { %v1706_v4 = vadd.f32 %v1705_v30, %v1666_v2  ;;  %v3637_v30 = vld [vmem:[#allocation5 + $0x460] sm:$0xff]  }
 0x328   :  { %v3644_v56 = vld [vmem:[%s4561_s3 + $0x154] ss:$24 sps:$4 sm:$0xff]   ;;  %v3650_v62 = vld [vmem:[%s4561_s3 + $0x124] ss:$24 sps:$4 sm:$0xff]  }
 0x329   :  { %v1715_v5 = vmul.f32 1.442695, %v1706_v4  ;;  %v1712_v6 = vmul.f32 0.5, %v1706_v4  ;;  %vm1711_vm15 = vcmp.gt.f32.partialorder %v1706_v4, -0.001  ;;  %vm1719_vm1 = vcmp.gt.f32.partialorder %v1706_v4, 0.0 }
 0x32a   :  { %v3647_v2 = vld [vmem:[%s4561_s3 + $0x15c] ss:$24 sps:$4 sm:$0xff]  }
 0x32b   :  { %3728 = vpow2.f32 %v1715_v5  ;;  %v1713_v7 = vadd.f32 1.0, %v1712_v6  ;;  %v3656_v3 = vld [vmem:[%s4561_s3 + $0xf4] ss:$24 sps:$4 sm:$0xff]   ;;  %v3662_v5 = vld [vmem:[%s4561_s3 + $0xc4] ss:$24 sps:$4 sm:$0xff]  }
 0x32c   :  { %v3660_v6 = vld [vmem:[%s4561_s3 + $0xc0] ss:$24 sps:$4 sm:$0xff]  }
 0x32d   :  { %v1714_v41 = vmul.f32 %v1713_v7, %v1706_v4  ;;  %v3668_v7 = vld [vmem:[%s4561_s3 + $0x94] ss:$24 sps:$4 sm:$0xff]  }
 0x338   :  { %v3729_v40 = vpop.eup %3728 }
 0x339   :  { %v2889_v42 = vadd.f32 -1.0, %v3729_v40  ;;  %v3666_v40 = vld [vmem:[%s4561_s3 + $0x90] ss:$24 sps:$4 sm:$0xff]  }
 0x33b   :  { %v1718_v8 = vsel %vm1711_vm15, %v1714_v41, %v2889_v42  ;;  %v3674_v41 = vld [vmem:[%s4561_s3 + $0x64] ss:$24 sps:$4 sm:$0xff]   ;;  %v3672_v42 = vld [vmem:[%s4561_s3 + $0x60] ss:$24 sps:$4 sm:$0xff]  }
 0x33c   :  { %v1720_v11 = vsel %vm1719_vm1, %v1706_v4, %v1718_v8  ;;  %v3654_v4 = vld [vmem:[%s4561_s3 + $0xf0] ss:$24 sps:$4 sm:$0xff]   ;;  %v3680_v8 = vld [vmem:[%s4561_s3 + $0x34] ss:$24 sps:$4 sm:$0xff]  }
 0x33d   :  { %1721 = vst [vmem:[#allocation4 + $0x1] sm:$0x1] %v1720_v11  ;;  %v1729_v50 = vrot.slane %v1720_v11, %v4373_v21  ;;  %v3678_v11 = vld [vmem:[%s4561_s3 + $0x30] ss:$24 sps:$4 sm:$0xff]  }
 0x33f   :  { %v2890_v12 = vrot.slane %v1729_v50, 9  ;;  %v1734_v15 = vcombine.high %v1729_v50, %v1729_v50  ;;  %v2917_v50 = vld [vmem:[%s4560_s2 + $0x4] ss:$0 sm:$0xff] }
 0x341   :  { %1733 = vst [vmem:[#allocation4 + $0x3] sm:$0x1] %v2890_v12  ;;  %1736 = vst [vmem:[#allocation4 + $0x5] sm:$0x1] %v1734_v15 }
 0x348   :  { %v1737_v51 = vld [vmem:[#allocation4] sm:$0x3f] }
 0x349   :  { %v1739_v52 = vcombine.high %v1737_v51, %v1737_v51  ;;  %v1746_v16 = vrot.slane %v1737_v51, %v4373_v21 }
 0x34b   :  { %v1754_v19 = vcombine.high %v1746_v16, %v1746_v16  ;;  %v1753_v53 = vrot.slane %v1739_v52, %v4373_v21  ;;  %v1758_v55 = vpack.c.bf16 %v1746_v16, %v1746_v16 }
 0x34d   :  { %v1759_v20 = vpack.c.bf16 %v1754_v19, %v1754_v19  ;;  %v1760_v54 = vpack.c.bf16 %v1753_v53, %v1753_v53 }
 0x34f   :  { %1990 = vmatprep.mubr.bf16.mxu0 %v1759_v20  ;;  %3445 = vmatmul.mubr.bf16.vlgmr.msra.gmra.mxu1 %v1760_v54 }
 0x350   :  { %1991 = vmatmul.mubr.bf16.vlgmr.msra.gmra.mxu0 %v1758_v55  ;;  %3484 = vmatprep.mubr.msk.bf16.mxu1 %vm3804_vm0, %v3803_v37 }
 0x351   :  { %3464 = vmatprep.mubr.msk.bf16.mxu0 %vm3804_vm0, %v3803_v37  ;;  %3449 = vmatpush3.bf16.msra.mxu0 %v3626_v23 }
 0x352   :  { %3450 = vmatprep.subr.bf16.mxu0 %v3803_v37  ;;  %3469 = vmatpush3.bf16.msra.mxu1 %v3634_v31  ;;  %v3657_v31 = vld [vmem:[%s4561_s3 + $0xf8] ss:$24 sps:$4 sm:$0xff]  }
 0x353   :  { %3470 = vmatprep.subr.bf16.mxu1 %v3803_v37 }
 0x355   :  { %3451 = vmatpush3.bf16.msra.mxu0 %v3627_v57 }
 0x356   :  { %3452 = vmatprep.subr.bf16.mxu0 %v3803_v37  ;;  %3471 = vmatpush3.bf16.msra.mxu1 %v3635_v32  ;;  %v3665_v32 = vld [vmem:[%s4561_s3 + $0xcc] ss:$24 sps:$4 sm:$0xff]  }
 0x357   :  { %3472 = vmatprep.subr.bf16.mxu1 %v3803_v37 }
 0x359   :  { %3453 = vmatpush3.bf16.msra.mxu0 %v3628_v24 }
 0x35a   :  { %3454 = vmatprep.subr.bf16.mxu0 %v3803_v37  ;;  %3473 = vmatpush3.bf16.msra.mxu1 %v3636_v29 }
 0x35b   :  { %3474 = vmatprep.subr.bf16.mxu1 %v3803_v37 }
 0x35d   :  { %3455 = vmatpush3.bf16.msra.mxu0 %v3629_v58  ;;  %v3645_v58 = vld [vmem:[%s4561_s3 + $0x158] ss:$24 sps:$4 sm:$0xff]  }
 0x35e   :  { %3456 = vmatprep.subr.bf16.mxu0 %v3803_v37  ;;  %3475 = vmatpush3.bf16.msra.mxu1 %v3637_v30  ;;  %v3693_v30 = vld [vmem:[%s4561_s3 + $0x130] ss:$24 sps:$4 sm:$0xff]  }
 0x35f   :  { %3476 = vmatprep.subr.bf16.mxu1 %v3803_v37 }
 0x361   :  { %3457 = vmatpush3.bf16.msra.mxu0 %v3630_v27 }
 0x362   :  { %3458 = vmatprep.subr.bf16.mxu0 %v3803_v37  ;;  %3477 = vmatpush3.bf16.msra.mxu1 %v3638_v33  ;;  %v3698_v33 = vld [vmem:[%s4561_s3 + $0x104] ss:$24 sps:$4 sm:$0xff]  }
 0x363   :  { %3478 = vmatprep.subr.bf16.mxu1 %v3803_v37 }
 0x365   :  { %3459 = vmatpush3.bf16.msra.mxu0 %v3631_v59  ;;  %v3653_v59 = vld [vmem:[%s4561_s3 + $0x12c] ss:$24 sps:$4 sm:$0xff]  }
 0x366   :  { %3460 = vmatprep.subr.bf16.mxu0 %v3803_v37  ;;  %3479 = vmatpush3.bf16.msra.mxu1 %v3639_v34  ;;  %v3696_v34 = vld [vmem:[%s4561_s3 + $0x100] ss:$24 sps:$4 sm:$0xff]  }
 0x367   :  { %3480 = vmatprep.subr.bf16.mxu1 %v3803_v37 }
 0x369   :  { %3461 = vmatpush3.bf16.msra.mxu0 %v3632_v60  ;;  %v3651_v60 = vld [vmem:[%s4561_s3 + $0x128] ss:$24 sps:$4 sm:$0xff]  }
 0x36a   :  { %3462 = vmatprep.subr.bf16.mxu0 %v3803_v37  ;;  %3481 = vmatpush3.bf16.msra.mxu1 %v3640_v36  ;;  %v3701_v36 = vld [vmem:[%s4561_s3 + $0xd4] ss:$24 sps:$4 sm:$0xff]  }
 0x36b   :  { %3482 = vmatprep.subr.bf16.mxu1 %v3803_v37  ;;  %v3648_v37 = vld [vmem:[%s4561_s3 + $0x120] ss:$24 sps:$4 sm:$0xff]  }
 0x36d   :  { %3463 = vmatpush3.bf16.msra.mxu0 %v3633_v28  ;;  %v3659_v28 = vld [vmem:[%s4561_s3 + $0xfc] ss:$24 sps:$4 sm:$0xff]  }
 0x36e   :  { %3483 = vmatpush3.bf16.msra.mxu1 %v3641_v38  ;;  %2568 = vmatprep.subr.bf16.mxu0 %v3644_v56  ;;  %v3699_v38 = vld [vmem:[%s4561_s3 + $0xd0] ss:$24 sps:$4 sm:$0xff]   ;;  %v3702_v56 = vld [vmem:[%s4561_s3 + $0xa0] ss:$24 sps:$4 sm:$0xff]  }
 0x36f   :  { %2609 = vmatprep.subr.bf16.mxu1 %v3647_v2  ;;  %v3707_v2 = vld [vmem:[%s4561_s3 + $0x74] ss:$24 sps:$4 sm:$0xff]  }
 0x40f   :  { %v2032_v61 = vpop.f32.mrf.mxu1 }
 0x410   :  { %v3275_v63 = vpop.f32.mrf.mxu0 }
 0x411   :  { %v3446_v0 = vpop.f32.mrf.mxu1 }
 0x412   :  { %v3276_v1 = vpop.f32.mrf.mxu0  ;;  %v3669_v0 = vld [vmem:[%s4561_s3 + $0x98] ss:$24 sps:$4 sm:$0xff]  }
 0x413   :  { %v3277_v9 = vadd.f32 %v3276_v1, %v3275_v63  ;;  %v2035_v10 = vpop.f32.mrf.mxu1  ;;  %v3671_v63 = vld [vmem:[%s4561_s3 + $0x9c] ss:$24 sps:$4 sm:$0xff]   ;;  %v3675_v1 = vld [vmem:[%s4561_s3 + $0x68] ss:$24 sps:$4 sm:$0xff]  }
 0x414   :  { %v3278_v13 = vpop.f32.mrf.mxu0  ;;  %v3681_v10 = vld [vmem:[%s4561_s3 + $0x38] ss:$24 sps:$4 sm:$0xff]  }
 0x415   :  { %v1993_v14 = vadd.f32 %v3277_v9, %v2891_v35  ;;  %v3447_v17 = vpop.f32.mrf.mxu1  ;;  %v3677_v35 = vld [vmem:[%s4561_s3 + $0x6c] ss:$24 sps:$4 sm:$0xff]   ;;  %v3683_v9 = vld [vmem:[%s4561_s3 + $0x3c] ss:$24 sps:$4 sm:$0xff]  }
 0x416   :  { %v3279_v43 = vpop.f32.mrf.mxu0  ;;  %v3686_v13 = vld [vmem:[%s4561_s3 + $0x4] ss:$24 sps:$4 sm:$0xff]  }
 0x417   :  { %v2033_v44 = vadd.f32 %v2032_v61, %v1993_v14  ;;  %v3663_v61 = vld [vmem:[%s4561_s3 + $0xc8] ss:$24 sps:$4 sm:$0xff]   ;;  %v3689_v17 = vld [vmem:[%s4561_s3 + $0xc] ss:$24 sps:$4 sm:$0xff]  }
 0x418   :  { %v3684_v14 = vld [vmem:[%s4561_s3] ss:$24 sps:$4 sm:$0xff]  }
 0x419   :  { %v2042_v45 = vmul.f32 1.442695, %v2033_v44  ;;  %v2039_v47 = vmul.f32 0.5, %v2033_v44  ;;  %vm2038_vm0 = vcmp.gt.f32.partialorder %v2033_v44, -0.001  ;;  %vm2046_vm2 = vcmp.gt.f32.partialorder %v2033_v44, 0.0 }
 0x41a   :  { %v3687_v43 = vld [vmem:[%s4561_s3 + $0x8] ss:$24 sps:$4 sm:$0xff]  }
 0x41b   :  { %3730 = vpow2.f32 %v2042_v45  ;;  %v2040_v48 = vadd.f32 1.0, %v2039_v47  ;;  %v3806_v45 = vmov 0   ;;  %v2927_v47 = vld [vmem:[%s4560_s2 + $0x5] ss:$0 sm:$0xff] }
 0x41d   :  { %v2041_v18 = vmul.f32 %v2040_v48, %v2033_v44 }
 0x428   :  { %v3731_v49 = vpop.eup %3730 }
 0x429   :  { %v2916_v46 = vadd.f32 -1.0, %v3731_v49 }
 0x42b   :  { %v2045_v22 = vsel %vm2038_vm0, %v2041_v18, %v2916_v46  ;;  %v3690_v46 = vld [vmem:[%s4561_s3 + $0x160] ss:$24 sps:$4 sm:$0xff]  }
 0x42c   :  { %v2047_v25 = vsel %vm2046_vm2, %v2033_v44, %v2045_v22  ;;  %v3692_v44 = vld [vmem:[%s4561_s3 + $0x164] ss:$24 sps:$4 sm:$0xff]  }
 0x42d   :  { %v2048_v26 = vpack.c.bf16 %v2047_v25, %v2047_v25  ;;  %v3695_v25 = vld [vmem:[%s4561_s3 + $0x134] ss:$24 sps:$4 sm:$0xff]  }
 0x42f   :  { %3465 = vmatmul.mubr.bf16.vlgmr.msra.gmra.mxu0 %v2048_v26 }
 0x430   :  { %2569 = vmatpush1.bf16.msra.mxu0 %v3642_v39  ;;  %2600 = vmatprep.mubr.bf16.mxu0 %v3806_v45  ;;  %v3704_v39 = vld [vmem:[%s4561_s3 + $0xa4] ss:$24 sps:$4 sm:$0xff]  }
 0x431   :  { %2570 = vmatprep.subr.bf16.mxu0 %v3650_v62  ;;  %v3705_v62 = vld [vmem:[%s4561_s3 + $0x70] ss:$24 sps:$4 sm:$0xff]  }
 0x434   :  { %2571 = vmatpush1.bf16.msra.mxu0 %v3648_v37  ;;  %v3710_v37 = vld [vmem:[%s4561_s3 + $0x44] ss:$24 sps:$4 sm:$0xff]  }
 0x435   :  { %2572 = vmatprep.subr.bf16.mxu0 %v3656_v3  ;;  %v3708_v3 = vld [vmem:[%s4561_s3 + $0x40] ss:$24 sps:$4 sm:$0xff]  }
 0x438   :  { %2573 = vmatpush1.bf16.msra.mxu0 %v3654_v4  ;;  %v3713_v4 = vld [vmem:[%s4561_s3 + $0x14] ss:$24 sps:$4 sm:$0xff]  }
 0x439   :  { %2574 = vmatprep.subr.bf16.mxu0 %v3662_v5  ;;  %v3711_v5 = vld [vmem:[%s4561_s3 + $0x10] ss:$24 sps:$4 sm:$0xff]  }
 0x43c   :  { %2575 = vmatpush1.bf16.msra.mxu0 %v3660_v6 }
 0x43d   :  { %2576 = vmatprep.subr.bf16.mxu0 %v3668_v7 }
 0x440   :  { %2577 = vmatpush1.bf16.msra.mxu0 %v3666_v40 }
 0x441   :  { %2578 = vmatprep.subr.bf16.mxu0 %v3674_v41 }
 0x444   :  { %2579 = vmatpush1.bf16.msra.mxu0 %v3672_v42 }
 0x445   :  { %2580 = vmatprep.subr.bf16.mxu0 %v3680_v8 }
 0x448   :  { %2581 = vmatpush1.bf16.msra.mxu0 %v3678_v11 }
 0x449   :  { %2582 = vmatprep.subr.bf16.mxu0 %v3686_v13 }
 0x44c   :  { %2583 = vmatpush1.bf16.msra.mxu0 %v3684_v14 }
 0x44d   :  { %2650 = vmatprep.subr.bf16.mxu0 %v3692_v44 }
 0x4ef   :  { %v2152_v12 = vpop.f32.mrf.mxu0 }
 0x4f0   :  { %v2153_v15 = vadd.f32 %v2917_v50, %v2152_v12 }
 0x4f1   :  { %v3466_v51 = vpop.f32.mrf.mxu0 }
 0x4f2   :  { %v2162_v52 = vmul.f32 1.442695, %v2153_v15  ;;  %v2159_v53 = vmul.f32 0.5, %v2153_v15  ;;  %vm2158_vm3 = vcmp.gt.f32.partialorder %v2153_v15, -0.001  ;;  %vm2166_vm4 = vcmp.gt.f32.partialorder %v2153_v15, 0.0 }
 0x4f3   :  { %v2155_v16 = vpop.f32.mrf.mxu0 }
 0x4f4   :  { %3732 = vpow2.f32 %v2162_v52  ;;  %v2160_v20 = vadd.f32 1.0, %v2159_v53 }
 0x4f5   :  { %v3467_v19 = vpop.f32.mrf.mxu0 }
 0x4f6   :  { %v2161_v55 = vmul.f32 %v2160_v20, %v2153_v15 }
 0x501   :  { %v3733_v54 = vpop.eup %3732 }
 0x502   :  { %v2926_v23 = vadd.f32 -1.0, %v3733_v54 }
 0x504   :  { %v2165_v57 = vsel %vm2158_vm3, %v2161_v55, %v2926_v23 }
 0x505   :  { %v2167_v24 = vsel %vm2166_vm4, %v2153_v15, %v2165_v57 }
 0x506   :  { %v2168_v27 = vpack.c.bf16 %v2167_v24, %v2167_v24 }
 0x508   :  { %3485 = vmatmul.mubr.bf16.vlgmr.msra.gmra.mxu1 %v2168_v27 }
 0x509   :  { %2610 = vmatpush1.bf16.msra.mxu1 %v3645_v58  ;;  %2641 = vmatprep.mubr.bf16.mxu1 %v3806_v45 }
 0x50a   :  { %2611 = vmatprep.subr.bf16.mxu1 %v3653_v59 }
 0x50d   :  { %2612 = vmatpush1.bf16.msra.mxu1 %v3651_v60 }
 0x50e   :  { %2613 = vmatprep.subr.bf16.mxu1 %v3659_v28 }
 0x511   :  { %2614 = vmatpush1.bf16.msra.mxu1 %v3657_v31 }
 0x512   :  { %2615 = vmatprep.subr.bf16.mxu1 %v3665_v32 }
 0x515   :  { %2616 = vmatpush1.bf16.msra.mxu1 %v3663_v61 }
 0x516   :  { %2617 = vmatprep.subr.bf16.mxu1 %v3671_v63 }
 0x519   :  { %2618 = vmatpush1.bf16.msra.mxu1 %v3669_v0 }
 0x51a   :  { %2619 = vmatprep.subr.bf16.mxu1 %v3677_v35 }
 0x51d   :  { %2620 = vmatpush1.bf16.msra.mxu1 %v3675_v1 }
 0x51e   :  { %2621 = vmatprep.subr.bf16.mxu1 %v3683_v9 }
 0x521   :  { %2622 = vmatpush1.bf16.msra.mxu1 %v3681_v10 }
 0x522   :  { %2623 = vmatprep.subr.bf16.mxu1 %v3689_v17 }
 0x525   :  { %2624 = vmatpush1.bf16.msra.mxu1 %v3687_v43 }
 0x5c8   :  { %v2272_v48 = vpop.f32.mrf.mxu1 }
 0x5c9   :  { %v2273_v49 = vadd.f32 %v2927_v47, %v2272_v48 }
 0x5ca   :  { %v3486_v18 = vpop.f32.mrf.mxu1 }
 0x5cb   :  { %v2279_v22 = vpack.c.bf16 %v2273_v49, %v2273_v49  ;;  %2278 = vst [vmem:[#allocation9] sm:$0x3] %v2273_v49 }
 0x5cc   :  { %v2275_v26 = vpop.f32.mrf.mxu1 }
 0x5cd   :  { %2601 = vmatmul.mubr.bf16.vlgmr.msra.gmra.mxu0 %v2279_v22  ;;  %2642 = vmatmul.mubr.bf16.vlgmr.msra.gmra.mxu1 %v2279_v22 }
 0x5ce   :  { %2651 = vmatpush1.bf16.msra.mxu0 %v3690_v46  ;;  %v3487_v29 = vpop.f32.mrf.mxu1  ;;  %2682 = vmatprep.mubr.bf16.mxu0 %v3806_v45 }
 0x5cf   :  { %2652 = vmatprep.subr.bf16.mxu0 %v3695_v25 }
 0x5d2   :  { %2653 = vmatpush1.bf16.msra.mxu0 %v3693_v30 }
 0x5d3   :  { %2654 = vmatprep.subr.bf16.mxu0 %v3698_v33 }
 0x5d6   :  { %2655 = vmatpush1.bf16.msra.mxu0 %v3696_v34 }
 0x5d7   :  { %2656 = vmatprep.subr.bf16.mxu0 %v3701_v36 }
 0x5da   :  { %2657 = vmatpush1.bf16.msra.mxu0 %v3699_v38 }
 0x5db   :  { %2658 = vmatprep.subr.bf16.mxu0 %v3704_v39 }
 0x5de   :  { %2659 = vmatpush1.bf16.msra.mxu0 %v3702_v56 }
 0x5df   :  { %2660 = vmatprep.subr.bf16.mxu0 %v3707_v2 }
 0x5e2   :  { %2661 = vmatpush1.bf16.msra.mxu0 %v3705_v62 }
 0x5e3   :  { %2662 = vmatprep.subr.bf16.mxu0 %v3710_v37 }
 0x5e6   :  { %2663 = vmatpush1.bf16.msra.mxu0 %v3708_v3 }
 0x5e7   :  { %2664 = vmatprep.subr.bf16.mxu0 %v3713_v4 }
 0x5ea   :  { %2665 = vmatpush1.bf16.msra.mxu0 %v3711_v5 }
 0x5ed   :  { %2683 = vmatmul.mubr.bf16.vlgmr.msra.gmra.mxu0 %v2279_v22 }
 0x5ee   :  { %3765 = shalt.err (!%p3762_p9)
}
 0x5ef   :  { %2745 = dma.vmem_to_hbm [thread:$0]  %s2743_s0, 32, %s4563_s5, [#allocation10]  }
 0x5f0   :  { %s3808_s3 = smov [#allocation8]  }
 0x5f1   :  { %s2732_s15 = sshll.u32 %s3808_s3, 4  ;;  %s2733_s15 = int_to_ptr.vmem [resolvable:$true] %s2732_s15 }
 0x5f2   :  { %s3774_s5 = scalar_lea.vmem %s2733_s15, 192  ;;  %p3779_p11 = scmp.lt.s32.totalorder %s2733_s15, %s2733_s15 }
 0x5f3   :  { %p3775_p10 = scmp.ne.s32.totalorder %s2733_s15, %s3774_s5  ;;  %p3780_p12 = scmp.lt.s32.totalorder %s3774_s5, %s3774_s5 }
 0x5f5   :  { %p3781_p13 = por %p3780_p12, %p3779_p11 }
 0x5f7   :  { %p3782_p0 = pnand %p3781_p13, %p3775_p10 }
 0x68d   :  { %v2602_v6 = vpop.f32.mrf.mxu0  ;;  %v2643_v7 = vpop.f32.mrf.mxu1 }
 0x68f   :  { %v2604_v40 = vpop.f32.mrf.mxu0  ;;  %v2645_v41 = vpop.f32.mrf.mxu1 }
 0x690   :  { %v2697_v42 = vcombine.low %v2602_v6, %v2604_v40  ;;  %v2698_v8 = vcombine.low %v2643_v7, %v2645_v41 }
 0x691   :  { %v2606_v11 = vpop.f32.mrf.mxu0  ;;  %v2647_v50 = vpop.f32.mrf.mxu1 }
 0x692   :  { %v2705_v12 = vrot.slane %v2697_v42, %v4373_v21  ;;  %v2712_v15 = vrot.slane %v2698_v8, %v4373_v21 }
 0x693   :  { %v2607_v51 = vpop.f32.mrf.mxu0  ;;  %v2648_v52 = vpop.f32.mrf.mxu1 }
 0x694   :  { %v2713_v16 = vcombine.low %v2705_v12, %v2712_v15 }
 0x696   :  { %2724 = vst [vmem:[#allocation8] sm:$0xff] %v2713_v16 }
 0x6ad   :  { %v2684_v19 = vpop.f32.mrf.mxu0 }
 0x6af   :  { %v2686_v53 = vpop.f32.mrf.mxu0 }
 0x6b0   :  { %v2714_v20 = vcombine.low %v2684_v19, %v2686_v53 }
 0x6b1   :  { %v2688_v54 = vpop.f32.mrf.mxu0 }
 0x6b2   :  { %2984 = vst.sshfl [vmem:[#allocation8 + $0x8] sm:$0x33 pattern:$0x76325410] %v2714_v20 }
 0x6b3   :  { %v2689_v55 = vpop.f32.mrf.mxu0 }
 0x6b4   :  { %3785 = shalt.err (!%p3782_p0)
}
 0x6b5   :  { %2735 = dma.vmem_to_hbm [thread:$0]  %s2733_s15, 192, %s4562_s4, [#allocation7]  }
 0x6b6   :  { %3796 = dma.done.wait [#allocation7], 192  }
 0x6b7   :  { %3797 = vsyncadd [#allocation7], 4294967104 }
 0x6b8   :  { %3798 = dma.done.wait [#allocation10], 32  }
 0x6b9   :  { %3799 = vsyncadd [#allocation10], 4294967264 }
 0x6ba   :  { %2752 = vsyncpa [#allocation6], 1 }
 0x6bb   :  { %2753 = vsyncpa [#allocation7], 1 }
 0x6bc   :  { %2754 = vsyncpa [#allocation10], 1 }

</bundles_post_ra>
